<compile_context>
chip_gen: v5e
topology: v5e:2x2
jax: 0.10.0
libtpu: 0.0.40
codegen_flags: <defaults>
</compile_context>

<pallas_src>
import jax
import jax.numpy as jnp
from jax.experimental import pallas as pl
from jax.experimental.pallas import tpu as pltpu

OUT_PAD = 128  # output lanes padded to one full vreg lane width


# ----------------------------- fused forward kernel -----------------------------

def _hybridnet_kernel(xs_ref, weff_ref, beff_ref, wfc_ref, mask_ref, fold_ref,
                      red_ref, bfc_ref, o_ref):
    """Whole (folded) batch in one grid step.

    xs_ref  : (B*kpad, 896)   5x5 im2col slab, row = b*kpad + (u*5+v)*cin + c,
                              col = h*W + w (w >= 28 columns are finite garbage)
    weff_ref: (B*16, B*kpad)  effective 5x5 conv weight, block-diagonal over batch
    beff_ref: (B*16, 1)       effective conv bias (tiled over batch)
    wfc_ref : (896, 160)      fc weight packed [h*W+w, o*10+j]; zero rows for w >= 28
    mask_ref: (B*16, 160)     block-diagonal channel mask (row o keeps cols o*10..o*10+9)
    fold_ref: (160, 128)      fold[q, j] = (q % 10 == j)
    red_ref : (B, B*16)       red[b, r]  = (r // 16 == b)
    bfc_ref : (1, 128)        fc bias padded to 128 lanes
    o_ref   : (B, 128)
    """
    # Effective 5x5 conv for the whole folded batch: one MXU matmul (K = B*kpad).
    acc = jnp.dot(weff_ref[...], xs_ref[...],
                  preferred_element_type=jnp.float32) + beff_ref[...]      # (B*16, 896)

    # fc: one lane-dense MXU matmul, M = B*16 rows, K = 896 lanes.
    g = jnp.dot(acc, wfc_ref[...], preferred_element_type=jnp.float32)     # (B*16, 160)

    # Diagonal-block selection + reductions (replaces the old 16-step serial gather):
    gm = g * mask_ref[...]                                                 # VPU
    h = jnp.dot(gm, fold_ref[...], preferred_element_type=jnp.float32)     # (B*16, 128)
    out = jnp.dot(red_ref[...], h, preferred_element_type=jnp.float32)     # (B, 128)
    o_ref[...] = out + bfc_ref[...]


# ------------------------------- host-side wrapper -------------------------------

def hybridnet_forward(x_nchw, kparams):
    """replacement_lvl=0 HybridNet forward, fully fused into one Pallas kernel."""
    B, cin, H, W = x_nchw.shape
    c2 = kparams["beff"].shape[0]            # 16 conv output channels
    n_out = kparams["bfc"].shape[1]          # 10 classes
    kpad = kparams["weff"].shape[1]          # 25*cin padded to a multiple of 8
    h2 = H - 4                               # 28 (two valid 3x3 convs == one valid 5x5)
    cols = h2 * W                            # 896 = 7*128 for 32x32 inputs
    assert kparams["wfc"].shape == (cols, c2 * n_out)

    # ---- host-side 5x5 im2col (layout plumbing on a 4 KB input) ----
    offs = [u * W + v for u in range(5) for v in range(5)]
    x_flat = x_nchw.reshape(B, cin, H * W)
    pad = max(0, cols + offs[-1] - H * W)
    x_flat = jnp.pad(x_flat, ((0, 0), (0, 0), (0, pad)))
    xs = jnp.stack([x_flat[:, :, o:o + cols] for o in offs], axis=1)   # (B, 25, cin, cols)
    xs = xs.reshape(B, 25 * cin, cols)
    xs = jnp.pad(xs, ((0, 0), (0, kpad - 25 * cin), (0, 0)))           # (B, kpad, cols)
    xs = xs.reshape(B * kpad, cols)

    # Block-diagonal conv weight / tiled bias for the folded batch (tiny ops).
    weff_b = jnp.kron(jnp.eye(B, dtype=jnp.float32), kparams["weff"])  # (B*c2, B*kpad)
    beff_b = jnp.tile(kparams["beff"], (B, 1))                         # (B*c2, 1)

    # Constant selection matrices (XLA constant-folds these under jit).
    mask = (jnp.arange(c2)[:, None] == (jnp.arange(c2 * n_out)[None, :] // n_out))
    mask = jnp.tile(mask.astype(jnp.float32), (B, 1))                  # (B*c2, c2*n_out)
    fold = (jnp.arange(c2 * n_out)[:, None] % n_out
            == jnp.arange(OUT_PAD)[None, :]).astype(jnp.float32)       # (c2*n_out, 128)
    red = (jnp.arange(B)[:, None]
           == (jnp.arange(B * c2)[None, :] // c2)).astype(jnp.float32)  # (B, B*c2)
    bfc = jnp.pad(kparams["bfc"], ((0, 0), (0, OUT_PAD - n_out)))       # (1, 128)

    out = pl.pallas_call(
        _hybridnet_kernel,
        out_shape=jax.ShapeDtypeStruct((B, OUT_PAD), jnp.float32),
        grid_spec=pltpu.PrefetchScalarGridSpec(
            num_scalar_prefetch=0,
            grid=(1,),  # whole (tiny) batch folded into one step; everything fits VMEM
            in_specs=[
                pl.BlockSpec((B * kpad, cols), lambda i: (0, 0)),
                pl.BlockSpec((B * c2, B * kpad), lambda i: (0, 0)),
                pl.BlockSpec((B * c2, 1), lambda i: (0, 0)),
                pl.BlockSpec((cols, c2 * n_out), lambda i: (0, 0)),
                pl.BlockSpec((B * c2, c2 * n_out), lambda i: (0, 0)),
                pl.BlockSpec((c2 * n_out, OUT_PAD), lambda i: (0, 0)),
                pl.BlockSpec((B, B * c2), lambda i: (0, 0)),
                pl.BlockSpec((1, OUT_PAD), lambda i: (0, 0)),
            ],
            out_specs=pl.BlockSpec((B, OUT_PAD), lambda i: (0, 0)),
        ),
        compiler_params=pltpu.CompilerParams(
            dimension_semantics=("arbitrary",),
        ),
    )(xs, weff_b, beff_b, kparams["wfc"], mask, fold, red, bfc)
    return out[:, :n_out]


# ------------------------------ params (torch layout) -----------------------------

def init_params(key, in_channels):
    k1, k2, k3, k4, k5, k6 = jax.random.split(key, 6)
    return {
        "conv1_w": 0.1 * jax.random.normal(k1, (32, in_channels, 3, 3), jnp.float32),
        "conv1_b": 0.1 * jax.random.normal(k2, (32,), jnp.float32),
        "conv2_w": 0.1 * jax.random.normal(k3, (16, 32, 3, 3), jnp.float32),
        "conv2_b": 0.1 * jax.random.normal(k4, (16,), jnp.float32),
        # stored as (in_features, out_features); in_features ordering is the NCHW
        # flatten (c, h, w), matching torch.nn.Flatten + nn.Linear.
        "fc_w": 0.01 * jax.random.normal(k5, (16 * 28 * 28, 10), jnp.float32),
        "fc_b": 0.1 * jax.random.normal(k6, (10,), jnp.float32),
    }


def prepare_kernel_params(params, height=32, width=32):
    """One-time host-side repack of torch-layout weights into the kernel layout."""
    c1, cin = params["conv1_w"].shape[:2]          # 32, Cin
    c2 = params["conv2_w"].shape[0]                # 16
    n_out = params["fc_b"].shape[0]                # 10
    h2, w2 = height - 4, width - 4                 # 28, 28

    w1 = params["conv1_w"]                         # (c1, cin, 3, 3)
    w2k = params["conv2_w"]                        # (c2, c1, 3, 3)

    # Compose the two valid 3x3 cross-correlations into one effective valid 5x5 conv.
    weff = jnp.zeros((c2, cin, 5, 5), jnp.float32)
    for p in range(3):
        for q in range(3):
            weff = weff.at[:, :, p:p + 3, q:q + 3].add(
                jnp.einsum("om,mcab->ocab", w2k[:, :, p, q], w1))
    beff = params["conv2_b"] + jnp.einsum("m,ompq->o", params["conv1_b"], w2k)

    # Kernel layout: (c2, (u, v, c)) with K padded to a multiple of 8 sublanes.
    kdim = 25 * cin
    kpad = ((kdim + 7) // 8) * 8
    weff_k = weff.transpose(0, 2, 3, 1).reshape(c2, kdim)
    weff_k = jnp.pad(weff_k, ((0, 0), (0, kpad - kdim)))

    # fc weight: rows (c, h, w) -> slab-packed [h*width + w, c*n_out + j]; the w >= w2
    # "garbage" columns of the conv slab get zero rows (requires finite inputs).
    wfc = params["fc_w"].reshape(c2, h2, w2, n_out)
    wfc = jnp.pad(wfc, ((0, 0), (0, 0), (0, width - w2), (0, 0)))
    wfc = wfc.transpose(1, 2, 0, 3).reshape(h2 * width, c2 * n_out)

    return {
        "weff": weff_k,                        # (c2, kpad)
        "beff": beff.reshape(c2, 1),           # (c2, 1)
        "wfc": wfc,                            # (h2*width, c2*n_out)
        "bfc": params["fc_b"].reshape(1, n_out),
    }


# ------------------------------- pure-JAX reference --------------------------------

def reference_forward(x, p):
    dn = ("NCHW", "OIHW", "NCHW")
    h = jax.lax.conv_general_dilated(
        x, p["conv1_w"], (1, 1), "VALID",
        dimension_numbers=jax.lax.conv_dimension_numbers(x.shape, p["conv1_w"].shape, dn))
    h = h + p["conv1_b"][None, :, None, None]
    h2 = jax.lax.conv_general_dilated(
        h, p["conv2_w"], (1, 1), "VALID",
        dimension_numbers=jax.lax.conv_dimension_numbers(h.shape, p["conv2_w"].shape, dn))
    h2 = h2 + p["conv2_b"][None, :, None, None]
    flat = h2.reshape(h2.shape[0], -1)
    return flat @ p["fc_w"] + p["fc_b"]


if __name__ == "__main__":
    key = jax.random.PRNGKey(0)
    kx, kp = jax.random.split(key)

    B, in_channels = 2, 1
    # Spatial size 32 is implied by the module: 32 -> 30 -> 28, then Linear(16*28*28, 10).
    x = jax.random.normal(kx, (B, in_channels, 32, 32), jnp.float32)
    params = init_params(kp, in_channels)
    kparams = prepare_kernel_params(params)

    out = jax.jit(hybridnet_forward)(x, kparams)
    out = jax.block_until_ready(out)
    assert out.shape == (B, 10), out.shape

    ref = reference_forward(x, params)
    assert jnp.allclose(out, ref, rtol=1e-3, atol=1e-2), (
        float(jnp.max(jnp.abs(out - ref))))

    print("KERNEL_OK")
</pallas_src>

<mosaic_0001>
module attributes {stable_mosaic.version = 11 : i64} {
  func.func @_hybridnet_kernel(%arg0: i32, %arg1: memref<64x896xf32, #tpu.memory_space<vmem>>, %arg2: memref<32x64xf32, #tpu.memory_space<vmem>>, %arg3: memref<32x1xf32, #tpu.memory_space<vmem>>, %arg4: memref<896x160xf32, #tpu.memory_space<vmem>>, %arg5: memref<32x160xf32, #tpu.memory_space<vmem>>, %arg6: memref<160x128xf32, #tpu.memory_space<vmem>>, %arg7: memref<2x32xf32, #tpu.memory_space<vmem>>, %arg8: memref<1x128xf32, #tpu.memory_space<vmem>>, %arg9: memref<2x128xf32, #tpu.memory_space<vmem>>) attributes {dimension_semantics = [#tpu.dimension_semantics<arbitrary>], iteration_bounds = array<i64: 1>, scalar_prefetch = 0 : i64, scratch_operands = 0 : i64, tpu.core_type = #tpu.core_type<tc>, window_params = [{pipeline_mode = #tpu.pipeline_mode<synchronous>, transform_indices = @transform_0, window_bounds = array<i64: 64, 896>}, {pipeline_mode = #tpu.pipeline_mode<synchronous>, transform_indices = @transform_1, window_bounds = array<i64: 32, 64>}, {pipeline_mode = #tpu.pipeline_mode<synchronous>, transform_indices = @transform_2, window_bounds = array<i64: 32, 1>}, {pipeline_mode = #tpu.pipeline_mode<synchronous>, transform_indices = @transform_3, window_bounds = array<i64: 896, 160>}, {pipeline_mode = #tpu.pipeline_mode<synchronous>, transform_indices = @transform_4, window_bounds = array<i64: 32, 160>}, {pipeline_mode = #tpu.pipeline_mode<synchronous>, transform_indices = @transform_5, window_bounds = array<i64: 160, 128>}, {pipeline_mode = #tpu.pipeline_mode<synchronous>, transform_indices = @transform_6, window_bounds = array<i64: 2, 32>}, {pipeline_mode = #tpu.pipeline_mode<synchronous>, transform_indices = @transform_7, window_bounds = array<i64: 1, 128>}, {pipeline_mode = #tpu.pipeline_mode<synchronous>, transform_indices = @transform_8, window_bounds = array<i64: 2, 128>}]} {
    %c0 = arith.constant 0 : index
    %c0_0 = arith.constant 0 : index
    %0 = vector.load %arg2[%c0, %c0_0] : memref<32x64xf32, #tpu.memory_space<vmem>>, vector<32x64xf32>
    %c0_1 = arith.constant 0 : index
    %c0_2 = arith.constant 0 : index
    %1 = vector.load %arg1[%c0_1, %c0_2] : memref<64x896xf32, #tpu.memory_space<vmem>>, vector<64x896xf32>
    %cst = arith.constant dense<0.000000e+00> : vector<32x896xf32>
    %2 = tpu.matmul %0, %1, %cst {dimension_numbers = #tpu.dot_dimension_numbers<[1], [0], [0], [1], [0, 0, 1, 1], [], []>} : vector<32x64xf32>, vector<64x896xf32>, vector<32x896xf32> -> vector<32x896xf32>
    %c0_3 = arith.constant 0 : index
    %c0_4 = arith.constant 0 : index
    %3 = vector.load %arg3[%c0_3, %c0_4] : memref<32x1xf32, #tpu.memory_space<vmem>>, vector<32x1xf32>
    %4 = vector.broadcast %3 : vector<32x1xf32> to vector<32x896xf32>
    %5 = arith.addf %2, %4 : vector<32x896xf32>
    %c0_5 = arith.constant 0 : index
    %c0_6 = arith.constant 0 : index
    %6 = vector.load %arg4[%c0_5, %c0_6] : memref<896x160xf32, #tpu.memory_space<vmem>>, vector<896x160xf32>
    %cst_7 = arith.constant dense<0.000000e+00> : vector<32x160xf32>
    %7 = tpu.matmul %5, %6, %cst_7 {dimension_numbers = #tpu.dot_dimension_numbers<[1], [0], [0], [1], [0, 0, 1, 1], [], []>} : vector<32x896xf32>, vector<896x160xf32>, vector<32x160xf32> -> vector<32x160xf32>
    %c0_8 = arith.constant 0 : index
    %c0_9 = arith.constant 0 : index
    %8 = vector.load %arg5[%c0_8, %c0_9] : memref<32x160xf32, #tpu.memory_space<vmem>>, vector<32x160xf32>
    %9 = arith.mulf %7, %8 : vector<32x160xf32>
    %c0_10 = arith.constant 0 : index
    %c0_11 = arith.constant 0 : index
    %10 = vector.load %arg6[%c0_10, %c0_11] : memref<160x128xf32, #tpu.memory_space<vmem>>, vector<160x128xf32>
    %cst_12 = arith.constant dense<0.000000e+00> : vector<32x128xf32>
    %11 = tpu.matmul %9, %10, %cst_12 {dimension_numbers = #tpu.dot_dimension_numbers<[1], [0], [0], [1], [0, 0, 1, 1], [], []>} : vector<32x160xf32>, vector<160x128xf32>, vector<32x128xf32> -> vector<32x128xf32>
    %c0_13 = arith.constant 0 : index
    %c0_14 = arith.constant 0 : index
    %12 = vector.load %arg7[%c0_13, %c0_14] : memref<2x32xf32, #tpu.memory_space<vmem>>, vector<2x32xf32>
    %cst_15 = arith.constant dense<0.000000e+00> : vector<2x128xf32>
    %13 = tpu.matmul %12, %11, %cst_15 {dimension_numbers = #tpu.dot_dimension_numbers<[1], [0], [0], [1], [0, 0, 1, 1], [], []>} : vector<2x32xf32>, vector<32x128xf32>, vector<2x128xf32> -> vector<2x128xf32>
    %c0_16 = arith.constant 0 : index
    %c0_17 = arith.constant 0 : index
    %14 = vector.load %arg8[%c0_16, %c0_17] : memref<1x128xf32, #tpu.memory_space<vmem>>, vector<1x128xf32>
    %15 = vector.broadcast %14 : vector<1x128xf32> to vector<2x128xf32>
    %16 = arith.addf %13, %15 : vector<2x128xf32>
    %c0_18 = arith.constant 0 : index
    %c0_19 = arith.constant 0 : index
    %17 = vector.load %arg9[%c0_18, %c0_19] : memref<2x128xf32, #tpu.memory_space<vmem>>, vector<2x128xf32>
    tpu.vector_store %arg9[%c0_18, %c0_19], %16 {strides = array<i32>} : memref<2x128xf32, #tpu.memory_space<vmem>>, vector<2x128xf32>,
    return
  }
  func.func @transform_0(%arg0: i32) -> (i32, i32) {
    %c0_i32 = arith.constant 0 : i32
    %c0_i32_0 = arith.constant 0 : i32
    %c0_i32_1 = arith.constant 0 : i32
    return %c0_i32, %c0_i32_0 : i32, i32
  }
  func.func @transform_1(%arg0: i32) -> (i32, i32) {
    %c0_i32 = arith.constant 0 : i32
    %c0_i32_0 = arith.constant 0 : i32
    %c0_i32_1 = arith.constant 0 : i32
    return %c0_i32, %c0_i32_0 : i32, i32
  }
  func.func @transform_2(%arg0: i32) -> (i32, i32) {
    %c0_i32 = arith.constant 0 : i32
    %c0_i32_0 = arith.constant 0 : i32
    %c0_i32_1 = arith.constant 0 : i32
    return %c0_i32, %c0_i32_0 : i32, i32
  }
  func.func @transform_3(%arg0: i32) -> (i32, i32) {
    %c0_i32 = arith.constant 0 : i32
    %c0_i32_0 = arith.constant 0 : i32
    %c0_i32_1 = arith.constant 0 : i32
    return %c0_i32, %c0_i32_0 : i32, i32
  }
  func.func @transform_4(%arg0: i32) -> (i32, i32) {
    %c0_i32 = arith.constant 0 : i32
    %c0_i32_0 = arith.constant 0 : i32
    %c0_i32_1 = arith.constant 0 : i32
    return %c0_i32, %c0_i32_0 : i32, i32
  }
  func.func @transform_5(%arg0: i32) -> (i32, i32) {
    %c0_i32 = arith.constant 0 : i32
    %c0_i32_0 = arith.constant 0 : i32
    %c0_i32_1 = arith.constant 0 : i32
    return %c0_i32, %c0_i32_0 : i32, i32
  }
  func.func @transform_6(%arg0: i32) -> (i32, i32) {
    %c0_i32 = arith.constant 0 : i32
    %c0_i32_0 = arith.constant 0 : i32
    %c0_i32_1 = arith.constant 0 : i32
    return %c0_i32, %c0_i32_0 : i32, i32
  }
  func.func @transform_7(%arg0: i32) -> (i32, i32) {
    %c0_i32 = arith.constant 0 : i32
    %c0_i32_0 = arith.constant 0 : i32
    %c0_i32_1 = arith.constant 0 : i32
    return %c0_i32, %c0_i32_0 : i32, i32
  }
  func.func @transform_8(%arg0: i32) -> (i32, i32) {
    %c0_i32 = arith.constant 0 : i32
    %c0_i32_0 = arith.constant 0 : i32
    %c0_i32_1 = arith.constant 0 : i32
    return %c0_i32, %c0_i32_0 : i32, i32
  }
}

</mosaic_0001>

<bundles_post_ra>
// kernel: hybridnet_forward.1
= control target key start
LH: loop header
LB: loop body
LE: loop exit
PB: predicated region body
PF: predicated region fallthrough
CT: control target
= control target key end

     0   :  { %vm114_vm0 = vcmask 523264   ;;  %v1184_v33 = vmov 0   ;;  %s2405_s0 = inlined_call_operand.vmem [shape: f32[64,896], index: 0, kind: input, shape index: {}]   ;;  %s2406_s1 = inlined_call_operand.vmem [shape: f32[32,64], index: 1, kind: input, shape index: {}]   ;;  %s2407_s2 = inlined_call_operand.vmem [shape: f32[32,1], index: 2, kind: input, shape index: {}]   ;;  %s2408_s3 = inlined_call_operand.vmem [shape: f32[896,160], index: 3, kind: input, shape index: {}]   ;;  %s2409_s4 = inlined_call_operand.vmem [shape: f32[32,160], index: 4, kind: input, shape index: {}]   ;;  %s2410_s5 = inlined_call_operand.vmem [shape: f32[160,128], index: 5, kind: input, shape index: {}]   ;;  %s2411_s6 = inlined_call_operand.vmem [shape: f32[2,32], index: 6, kind: input, shape index: {}]   ;;  %s2412_s7 = inlined_call_operand.vmem [shape: f32[1,128], index: 7, kind: input, shape index: {}]   ;;  %s2413_s8 = inlined_call_operand.hbm [shape: f32[2,128], index: 8, kind: output, shape index: {}]  }
   0x1   :  { %v83_v0 = vld [vmem:[%s2405_s0 + $0x188] sm:$0xff]  ;;  %v84_v1 = vld [vmem:[%s2405_s0 + $0x190] sm:$0xff]  ;;  %v85_v2 = vld [vmem:[%s2405_s0 + $0x198] sm:$0xff]  ;;  %1155 = vset.pattern.permute.xlu0 %v1184_v33 }
   0x2   :  { %135 = vmatpush.msra.mxu0 %v83_v0  ;;  %1145 = vmatpush.msra.mxu3 %v83_v0  ;;  %v76_v3 = vld [vmem:[%s2405_s0 + $0x150] sm:$0xff]  ;;  %v77_v4 = vld [vmem:[%s2405_s0 + $0x158] sm:$0xff]  ;;  %v78_v5 = vld [vmem:[%s2405_s0 + $0x160] sm:$0xff] }
   0x3   :  { %164 = vmatpush.msra.mxu1 %v84_v1  ;;  %193 = vmatpush.msra.mxu2 %v85_v2  ;;  %v69_v6 = vld [vmem:[%s2405_s0 + $0x118] sm:$0xff]  ;;  %v70_v7 = vld [vmem:[%s2405_s0 + $0x120] sm:$0xff]  ;;  %v71_v8 = vld [vmem:[%s2405_s0 + $0x128] sm:$0xff] }
   0x4   :  { %136 = vmatpush.msra.mxu0 %v76_v3  ;;  %1146 = vmatpush.msra.mxu3 %v76_v3  ;;  %v62_v9 = vld [vmem:[%s2405_s0 + $0xe0] sm:$0xff]  ;;  %v63_v10 = vld [vmem:[%s2405_s0 + $0xe8] sm:$0xff]  ;;  %v64_v11 = vld [vmem:[%s2405_s0 + $0xf0] sm:$0xff] }
   0x5   :  { %165 = vmatpush.msra.mxu1 %v77_v4  ;;  %194 = vmatpush.msra.mxu2 %v78_v5  ;;  %v55_v12 = vld [vmem:[%s2405_s0 + $0xa8] sm:$0xff]  ;;  %v56_v13 = vld [vmem:[%s2405_s0 + $0xb0] sm:$0xff]  ;;  %v57_v14 = vld [vmem:[%s2405_s0 + $0xb8] sm:$0xff] }
   0x6   :  { %137 = vmatpush.msra.mxu0 %v69_v6  ;;  %1147 = vmatpush.msra.mxu3 %v69_v6  ;;  %v48_v15 = vld [vmem:[%s2405_s0 + $0x70] sm:$0xff]  ;;  %v49_v16 = vld [vmem:[%s2405_s0 + $0x78] sm:$0xff]  ;;  %v50_v17 = vld [vmem:[%s2405_s0 + $0x80] sm:$0xff] }
   0x7   :  { %166 = vmatpush.msra.mxu1 %v70_v7  ;;  %195 = vmatpush.msra.mxu2 %v71_v8  ;;  %v41_v18 = vld [vmem:[%s2405_s0 + $0x38] sm:$0xff]  ;;  %v42_v19 = vld [vmem:[%s2405_s0 + $0x40] sm:$0xff]  ;;  %v43_v20 = vld [vmem:[%s2405_s0 + $0x48] sm:$0xff] }
   0x8   :  { %138 = vmatpush.msra.mxu0 %v62_v9  ;;  %1148 = vmatpush.msra.mxu3 %v62_v9  ;;  %v34_v21 = vld [vmem:[%s2405_s0] sm:$0xff]  ;;  %v35_v22 = vld [vmem:[%s2405_s0 + $0x8] sm:$0xff]  ;;  %v36_v23 = vld [vmem:[%s2405_s0 + $0x10] sm:$0xff] }
   0x9   :  { %167 = vmatpush.msra.mxu1 %v63_v10  ;;  %196 = vmatpush.msra.mxu2 %v64_v11  ;;  %v1306_v24 = vld [vmem:[%s2406_s1] sm:$0xff]  ;;  %v1311_v25 = vld [vmem:[%s2406_s1 + $0x10] sm:$0xff]  ;;  %v87_v27 = vld [vmem:[%s2405_s0 + $0x1a8] sm:$0xff] }
   0xa   :  { %139 = vmatpush.msra.mxu0 %v55_v12  ;;  %1149 = vmatpush.msra.mxu3 %v55_v12  ;;  %v86_v26 = vld [vmem:[%s2405_s0 + $0x1a0] sm:$0xff]  ;;  %v88_v28 = vld [vmem:[%s2405_s0 + $0x1b0] sm:$0xff]  ;;  %v79_v30 = vld [vmem:[%s2405_s0 + $0x168] sm:$0xff] }
   0xb   :  { %168 = vmatpush.msra.mxu1 %v56_v13  ;;  %197 = vmatpush.msra.mxu2 %v57_v14  ;;  %v90_v29 = vld [vmem:[%s2407_s2] sm:$0xff]  ;;  %v80_v31 = vld [vmem:[%s2405_s0 + $0x170] sm:$0xff]  ;;  %v89_v32 = vld [vmem:[%s2405_s0 + $0x1b8] sm:$0xff] }
   0xc   :  { %140 = vmatpush.msra.mxu0 %v48_v15  ;;  %1150 = vmatpush.msra.mxu3 %v48_v15  ;;  %v72_v34 = vld [vmem:[%s2405_s0 + $0x130] sm:$0xff]  ;;  %v73_v35 = vld [vmem:[%s2405_s0 + $0x138] sm:$0xff] }
   0xd   :  { %169 = vmatpush.msra.mxu1 %v49_v16  ;;  %198 = vmatpush.msra.mxu2 %v50_v17  ;;  %v92_v36 = vld [vmem:[%s2407_s2 + $0x10] sm:$0xff] }
   0xe   :  { %141 = vmatpush.msra.mxu0 %v41_v18  ;;  %1151 = vmatpush.msra.mxu3 %v41_v18 }
   0xf   :  { %170 = vmatpush.msra.mxu1 %v42_v19  ;;  %199 = vmatpush.msra.mxu2 %v43_v20 }
  0x10   :  { %142 = vmatpush.msra.mxu0 %v34_v21  ;;  %1152 = vmatpush.msra.mxu3 %v34_v21 }
  0x11   :  { %171 = vmatpush.msra.mxu1 %v35_v22  ;;  %200 = vmatpush.msra.mxu2 %v36_v23 }
  0x12   :  { %1112 = vmatmul.msk.f32.vlgmr.msra.gmra.mxu0 %vm114_vm0, %v1306_v24  ;;  %1114 = vmatmul.msk.f32.vlgmr.msra.gmra.mxu3 %vm114_vm0, %v1311_v25 }
  0x13   :  { %1116 = vmatmul.msk.f32.vlgmr.msra.gmra.mxu1 %vm114_vm0, %v1306_v24  ;;  %1120 = vmatmul.msk.f32.vlgmr.msra.gmra.mxu2 %vm114_vm0, %v1306_v24 }
  0x14   :  { %222 = vmatpush.msrb.mxu3 %v86_v26  ;;  %251 = vmatpush.msrb.mxu0 %v87_v27 }
  0x15   :  { %280 = vmatpush.msrb.mxu1 %v88_v28  ;;  %96 = vperm.xlu0 %1155, %v90_v29  }
  0x16   :  { %223 = vmatpush.msrb.mxu3 %v79_v30 }
  0x17   :  { %13 = vsyncpa [#allocation3], 0  ;;  %252 = vmatpush.msrb.mxu0 %v80_v31  ;;  %v65_v37 = vld [vmem:[%s2405_s0 + $0xf8] sm:$0xff]  ;;  %v1357_v38 = vld [vmem:[%s2406_s1 + $0x8] sm:$0xff]  ;;  %309 = vmatpush.msrb.mxu2 %v89_v32  ;;  %vm996_vm1 = vcmask 261120   ;;  %s1103_s26 = sshll.u32 %s2413_s8, 4  ;;  %s1104_s26 = int_to_ptr.hbm [resolvable:$true] %s1103_s26 }
  0x18   :  { %224 = vmatpush.msrb.mxu3 %v72_v34  ;;  %v66_v39 = vld [vmem:[%s2405_s0 + $0x100] sm:$0xff]  ;;  %v1365_v40 = vld [vmem:[%s2406_s1 + $0x18] sm:$0xff]  ;;  %1156 = vset.pattern.permute.xlu1 %v1184_v33  ;;  %v59_v42 = vld [vmem:[%s2405_s0 + $0xc8] sm:$0xff]  ;;  %s1185_s1 = smov [#allocation2]  }
  0x19   :  { %253 = vmatpush.msrb.mxu0 %v73_v35  ;;  %106 = vperm.xlu1 %1156, %v92_v36   ;;  %v58_v41 = vld [vmem:[%s2405_s0 + $0xc0] sm:$0xff]  ;;  %v91_v43 = vld [vmem:[%s2407_s2 + $0x8] sm:$0xff]  ;;  %v81_v44 = vld [vmem:[%s2405_s0 + $0x178] sm:$0xff]  ;;  %s1101_s23 = sshll.u32 %s1185_s1, 4  ;;  %s1102_s23 = int_to_ptr.vmem [resolvable:$true] %s1101_s23 }
  0x1a   :  { %225 = vmatpush.msrb.mxu3 %v65_v37  ;;  %1113 = vmatmul.msk.f32.gmra.mxu0 %vm114_vm0, %v1357_v38  ;;  %v51_v45 = vld [vmem:[%s2405_s0 + $0x88] sm:$0xff]  ;;  %v52_v46 = vld [vmem:[%s2405_s0 + $0x90] sm:$0xff]  ;;  %v82_v47 = vld [vmem:[%s2405_s0 + $0x180] sm:$0xff] }
  0x1b   :  { %254 = vmatpush.msrb.mxu0 %v66_v39  ;;  %1115 = vmatmul.msk.f32.gmra.mxu3 %vm114_vm0, %v1365_v40  ;;  %v74_v48 = vld [vmem:[%s2405_s0 + $0x140] sm:$0xff]  ;;  %v44_v49 = vld [vmem:[%s2405_s0 + $0x50] sm:$0xff]  ;;  %v45_v50 = vld [vmem:[%s2405_s0 + $0x58] sm:$0xff] }
  0x1c   :  { %1117 = vmatmul.msk.f32.gmra.mxu1 %vm114_vm0, %v1357_v38  ;;  %1121 = vmatmul.msk.f32.gmra.mxu2 %vm114_vm0, %v1357_v38  ;;  %v75_v51 = vld [vmem:[%s2405_s0 + $0x148] sm:$0xff]  ;;  %v37_v53 = vld [vmem:[%s2405_s0 + $0x18] sm:$0xff]  ;;  %v38_v54 = vld [vmem:[%s2405_s0 + $0x20] sm:$0xff] }
  0x1d   :  { %226 = vmatpush.msrb.mxu3 %v58_v41  ;;  %255 = vmatpush.msrb.mxu0 %v59_v42  ;;  %v67_v52 = vld [vmem:[%s2405_s0 + $0x108] sm:$0xff]  ;;  %v68_v55 = vld [vmem:[%s2405_s0 + $0x110] sm:$0xff]  ;;  %v93_v57 = vld [vmem:[%s2407_s2 + $0x18] sm:$0xff] }
  0x1e   :  { %101 = vperm.xlu0 %1155, %v91_v43   ;;  %281 = vmatpush.msrb.mxu1 %v81_v44  ;;  %v60_v56 = vld [vmem:[%s2405_s0 + $0xd0] sm:$0xff]  ;;  %v61_v58 = vld [vmem:[%s2405_s0 + $0xd8] sm:$0xff]  ;;  %v54_v60 = vld [vmem:[%s2405_s0 + $0xa0] sm:$0xff] }
  0x1f   :  { %227 = vmatpush.msrb.mxu3 %v51_v45  ;;  %256 = vmatpush.msrb.mxu0 %v52_v46  ;;  %v53_v59 = vld [vmem:[%s2405_s0 + $0x98] sm:$0xff]  ;;  %v46_v61 = vld [vmem:[%s2405_s0 + $0x60] sm:$0xff]  ;;  %v47_v62 = vld [vmem:[%s2405_s0 + $0x68] sm:$0xff] }
  0x20   :  { %310 = vmatpush.msrb.mxu2 %v82_v47  ;;  %282 = vmatpush.msrb.mxu1 %v74_v48  ;;  %v39_v63 = vld [vmem:[%s2405_s0 + $0x28] sm:$0xff]  ;;  %v360_v0 = vld [vmem:[%s2408_s3 + $0xf0] sm:$0xff]  ;;  %v358_v3 = vld [vmem:[%s2408_s3 + $0xe0] sm:$0xff] }
  0x21   :  { %228 = vmatpush.msrb.mxu3 %v44_v49  ;;  %257 = vmatpush.msrb.mxu0 %v45_v50  ;;  %v392_v1 = vld [vmem:[%s2408_s3 + $0x1f0] sm:$0xff]  ;;  %v390_v4 = vld [vmem:[%s2408_s3 + $0x1e0] sm:$0xff] }
  0x22   :  { %311 = vmatpush.msrb.mxu2 %v75_v51  ;;  %283 = vmatpush.msrb.mxu1 %v67_v52  ;;  %v40_v2 = vld [vmem:[%s2405_s0 + $0x30] sm:$0xff]  ;;  %v422_v6 = vld [vmem:[%s2408_s3 + $0x2e0] sm:$0xff] }
  0x23   :  { %229 = vmatpush.msrb.mxu3 %v37_v53  ;;  %258 = vmatpush.msrb.mxu0 %v38_v54  ;;  %v424_v5 = vld [vmem:[%s2408_s3 + $0x2f0] sm:$0xff]  ;;  %v354_v9 = vld [vmem:[%s2408_s3 + $0xc0] sm:$0xff] }
  0x24   :  { %1118 = vmatmul.msk.f32.gmra.mxu1 %vm114_vm0, %v1311_v25  ;;  %1122 = vmatmul.msk.f32.gmra.mxu2 %vm114_vm0, %v1311_v25  ;;  %v356_v7 = vld [vmem:[%s2408_s3 + $0xd0] sm:$0xff]  ;;  %v386_v10 = vld [vmem:[%s2408_s3 + $0x1c0] sm:$0xff] }
  0x25   :  { %1124 = vmatmul.msk.f32.vlgmr.msrb.gmra.mxu3 %vm114_vm0, %v1306_v24  ;;  %1128 = vmatmul.msk.f32.vlgmr.msrb.gmra.mxu0 %vm114_vm0, %v1306_v24  ;;  %v388_v8 = vld [vmem:[%s2408_s3 + $0x1d0] sm:$0xff]  ;;  %v418_v14 = vld [vmem:[%s2408_s3 + $0x2c0] sm:$0xff] }
  0x26   :  { %312 = vmatpush.msrb.mxu2 %v68_v55  ;;  %284 = vmatpush.msrb.mxu1 %v60_v56  ;;  %v420_v11 = vld [vmem:[%s2408_s3 + $0x2d0] sm:$0xff]  ;;  %v350_v15 = vld [vmem:[%s2408_s3 + $0xa0] sm:$0xff] }
  0x27   :  { %111 = vperm.xlu1 %1156, %v93_v57   ;;  %554 = vmatpush.msra.mxu3 %v360_v0  ;;  %v352_v12 = vld [vmem:[%s2408_s3 + $0xb0] sm:$0xff]  ;;  %v382_v16 = vld [vmem:[%s2408_s3 + $0x1a0] sm:$0xff] }
  0x28   :  { %313 = vmatpush.msrb.mxu2 %v61_v58  ;;  %285 = vmatpush.msrb.mxu1 %v53_v59  ;;  %v384_v13 = vld [vmem:[%s2408_s3 + $0x1b0] sm:$0xff]  ;;  %v414_v20 = vld [vmem:[%s2408_s3 + $0x2a0] sm:$0xff] }
  0x29   :  { %583 = vmatpush.msra.mxu0 %v392_v1  ;;  %555 = vmatpush.msra.mxu3 %v358_v3  ;;  %v416_v17 = vld [vmem:[%s2408_s3 + $0x2b0] sm:$0xff]  ;;  %v346_v21 = vld [vmem:[%s2408_s3 + $0x80] sm:$0xff] }
  0x2a   :  { %314 = vmatpush.msrb.mxu2 %v54_v60  ;;  %286 = vmatpush.msrb.mxu1 %v46_v61  ;;  %v348_v18 = vld [vmem:[%s2408_s3 + $0x90] sm:$0xff]  ;;  %v378_v22 = vld [vmem:[%s2408_s3 + $0x180] sm:$0xff] }
  0x2b   :  { %584 = vmatpush.msra.mxu0 %v390_v4  ;;  %556 = vmatpush.msra.mxu3 %v356_v7  ;;  %v380_v19 = vld [vmem:[%s2408_s3 + $0x190] sm:$0xff]  ;;  %v342_v27 = vld [vmem:[%s2408_s3 + $0x60] sm:$0xff] }
  0x2c   :  { %1119 = vmatmul.msk.f32.gmra.mxu1 %vm114_vm0, %v1365_v40  ;;  %1123 = vmatmul.msk.f32.gmra.mxu2 %vm114_vm0, %v1365_v40  ;;  %v412_v23 = vld [vmem:[%s2408_s3 + $0x290] sm:$0xff]  ;;  %v374_v28 = vld [vmem:[%s2408_s3 + $0x160] sm:$0xff] }
  0x2d   :  { %1125 = vmatmul.msk.f32.gmra.mxu3 %vm114_vm0, %v1357_v38  ;;  %1129 = vmatmul.msk.f32.gmra.mxu0 %vm114_vm0, %v1357_v38  ;;  %v376_v26 = vld [vmem:[%s2408_s3 + $0x170] sm:$0xff]  ;;  %v338_v31 = vld [vmem:[%s2408_s3 + $0x40] sm:$0xff] }
  0x2e   :  { %315 = vmatpush.msrb.mxu2 %v47_v62  ;;  %287 = vmatpush.msrb.mxu1 %v39_v63  ;;  %v340_v29 = vld [vmem:[%s2408_s3 + $0x50] sm:$0xff]  ;;  %v370_v32 = vld [vmem:[%s2408_s3 + $0x140] sm:$0xff] }
  0x2f   :  { %585 = vmatpush.msra.mxu0 %v388_v8  ;;  %557 = vmatpush.msra.mxu3 %v354_v9  ;;  %v372_v30 = vld [vmem:[%s2408_s3 + $0x150] sm:$0xff]  ;;  %v406_v37 = vld [vmem:[%s2408_s3 + $0x260] sm:$0xff] }
  0x30   :  { %316 = vmatpush.msrb.mxu2 %v40_v2  ;;  %612 = vmatpush.msra.mxu1 %v424_v5  ;;  %v408_v33 = vld [vmem:[%s2408_s3 + $0x270] sm:$0xff]  ;;  %v334_v39 = vld [vmem:[%s2408_s3 + $0x20] sm:$0xff] }
  0x31   :  { %586 = vmatpush.msra.mxu0 %v386_v10  ;;  %558 = vmatpush.msra.mxu3 %v352_v12  ;;  %v456_v34 = vld [vmem:[%s2408_s3 + $0x3f0] sm:$0xff]  ;;  %v402_v45 = vld [vmem:[%s2408_s3 + $0x240] sm:$0xff] }
  0x32   :  { %613 = vmatpush.msra.mxu1 %v422_v6  ;;  %v336_v35 = vld [vmem:[%s2408_s3 + $0x30] sm:$0xff]  ;;  %641 = vmatpush.msra.mxu2 %v456_v34  ;;  %v450_v46 = vld [vmem:[%s2408_s3 + $0x3c0] sm:$0xff]  ;;  %v361_v34 = vld [vmem:[%s2408_s3 + $0xf8] sm:$0xff] }
  0x33   :  { %587 = vmatpush.msra.mxu0 %v384_v13  ;;  %559 = vmatpush.msra.mxu3 %v350_v15  ;;  %v368_v36 = vld [vmem:[%s2408_s3 + $0x130] sm:$0xff]  ;;  %v330_v47 = vld [vmem:[%s2408_s3] sm:$0xff] }
  0x34   :  { %1132 = vmatmul.msk.f32.vlgmr.msrb.gmra.mxu1 %vm114_vm0, %v1306_v24  ;;  %1136 = vmatmul.msk.f32.vlgmr.msrb.gmra.mxu2 %vm114_vm0, %v1306_v24  ;;  %v344_v24 = vld [vmem:[%s2408_s3 + $0x70] sm:$0xff]  ;;  %v362_v48 = vld [vmem:[%s2408_s3 + $0x100] sm:$0xff] }
  0x35   :  { %1126 = vmatmul.msk.f32.gmra.mxu3 %vm114_vm0, %v1311_v25  ;;  %1130 = vmatmul.msk.f32.gmra.mxu0 %vm114_vm0, %v1311_v25  ;;  %v404_v41 = vld [vmem:[%s2408_s3 + $0x250] sm:$0xff]  ;;  %v398_v51 = vld [vmem:[%s2408_s3 + $0x220] sm:$0xff] }
  0x36   :  { %614 = vmatpush.msra.mxu1 %v420_v11  ;;  %588 = vmatpush.msra.mxu0 %v382_v16  ;;  %v452_v42 = vld [vmem:[%s2408_s3 + $0x3d0] sm:$0xff]  ;;  %v446_v52 = vld [vmem:[%s2408_s3 + $0x3a0] sm:$0xff] }
  0x37   :  { %560 = vmatpush.msra.mxu3 %v348_v18  ;;  %v332_v43 = vld [vmem:[%s2408_s3 + $0x10] sm:$0xff]  ;;  %v486_v57 = vld [vmem:[%s2408_s3 + $0x4e0] sm:$0xff] }
  0x38   :  { %615 = vmatpush.msra.mxu1 %v418_v14  ;;  %589 = vmatpush.msra.mxu0 %v380_v19  ;;  %v364_v44 = vld [vmem:[%s2408_s3 + $0x110] sm:$0xff]  ;;  %v518_v58 = vld [vmem:[%s2408_s3 + $0x5e0] sm:$0xff] }
  0x39   :  { %561 = vmatpush.msra.mxu3 %v346_v21  ;;  %v400_v49 = vld [vmem:[%s2408_s3 + $0x230] sm:$0xff]  ;;  %v394_v59 = vld [vmem:[%s2408_s3 + $0x200] sm:$0xff] }
  0x3a   :  { %616 = vmatpush.msra.mxu1 %v416_v17  ;;  %590 = vmatpush.msra.mxu0 %v378_v22  ;;  %v448_v50 = vld [vmem:[%s2408_s3 + $0x3b0] sm:$0xff]  ;;  %v442_v60 = vld [vmem:[%s2408_s3 + $0x380] sm:$0xff] }
  0x3b   :  { %562 = vmatpush.msra.mxu3 %v344_v24  ;;  %v488_v53 = vld [vmem:[%s2408_s3 + $0x4f0] sm:$0xff]  ;;  %v482_v0 = vld [vmem:[%s2408_s3 + $0x4c0] sm:$0xff] }
  0x3c   :  { %1133 = vmatmul.msk.f32.gmra.mxu1 %vm114_vm0, %v1357_v38  ;;  %1137 = vmatmul.msk.f32.gmra.mxu2 %vm114_vm0, %v1357_v38  ;;  %v454_v38 = vld [vmem:[%s2408_s3 + $0x3e0] sm:$0xff]  ;;  %v520_v54 = vld [vmem:[%s2408_s3 + $0x5f0] sm:$0xff] }
  0x3d   :  { %1127 = vmatmul.msk.f32.gmra.mxu3 %vm114_vm0, %v1365_v40  ;;  %1131 = vmatmul.msk.f32.gmra.mxu0 %vm114_vm0, %v1365_v40  ;;  %v396_v55 = vld [vmem:[%s2408_s3 + $0x210] sm:$0xff]  ;;  %v514_v1 = vld [vmem:[%s2408_s3 + $0x5c0] sm:$0xff] }
  0x3e   :  { %617 = vmatpush.msra.mxu1 %v414_v20  ;;  %591 = vmatpush.msra.mxu0 %v376_v26  ;;  %v444_v56 = vld [vmem:[%s2408_s3 + $0x390] sm:$0xff]  ;;  %v438_v3 = vld [vmem:[%s2408_s3 + $0x360] sm:$0xff] }
  0x3f   :  { %563 = vmatpush.msra.mxu3 %v342_v27  ;;  %642 = vmatpush.msra.mxu2 %v454_v38  ;;  %v484_v61 = vld [vmem:[%s2408_s3 + $0x4d0] sm:$0xff]  ;;  %v550_v6 = vld [vmem:[%s2408_s3 + $0x6e0] sm:$0xff] }
  0x40   :  { %618 = vmatpush.msra.mxu1 %v412_v23  ;;  %592 = vmatpush.msra.mxu0 %v374_v28  ;;  %v516_v62 = vld [vmem:[%s2408_s3 + $0x5d0] sm:$0xff]  ;;  %v478_v8 = vld [vmem:[%s2408_s3 + $0x4a0] sm:$0xff] }
  0x41   :  { %564 = vmatpush.msra.mxu3 %v340_v29  ;;  %643 = vmatpush.msra.mxu2 %v452_v42  ;;  %v440_v63 = vld [vmem:[%s2408_s3 + $0x370] sm:$0xff]  ;;  %v510_v9 = vld [vmem:[%s2408_s3 + $0x5a0] sm:$0xff] }
  0x42   :  { %593 = vmatpush.msra.mxu0 %v372_v30  ;;  %v552_v2 = vld [vmem:[%s2408_s3 + $0x6f0] sm:$0xff]  ;;  %v434_v11 = vld [vmem:[%s2408_s3 + $0x340] sm:$0xff] }
  0x43   :  { %565 = vmatpush.msra.mxu3 %v338_v31  ;;  %644 = vmatpush.msra.mxu2 %v450_v46  ;;  %v480_v4 = vld [vmem:[%s2408_s3 + $0x4b0] sm:$0xff]  ;;  %v546_v14 = vld [vmem:[%s2408_s3 + $0x6c0] sm:$0xff]  ;;  %v357_v46 = vld [vmem:[%s2408_s3 + $0xd8] sm:$0xff] }
  0x44   :  { %1134 = vmatmul.msk.f32.gmra.mxu1 %vm114_vm0, %v1311_v25  ;;  %1138 = vmatmul.msk.f32.gmra.mxu2 %vm114_vm0, %v1311_v25  ;;  %v410_v25 = vld [vmem:[%s2408_s3 + $0x280] sm:$0xff]  ;;  %v512_v5 = vld [vmem:[%s2408_s3 + $0x5b0] sm:$0xff] }
  0x45   :  { %619 = vmatpush.msra.mxu1 %v410_v25  ;;  %594 = vmatpush.msra.mxu0 %v370_v32  ;;  %v436_v7 = vld [vmem:[%s2408_s3 + $0x350] sm:$0xff]  ;;  %v474_v16 = vld [vmem:[%s2408_s3 + $0x480] sm:$0xff] }
  0x46   :  { %566 = vmatpush.msra.mxu3 %v336_v35  ;;  %645 = vmatpush.msra.mxu2 %v448_v50  ;;  %v548_v10 = vld [vmem:[%s2408_s3 + $0x6d0] sm:$0xff]  ;;  %v506_v17 = vld [vmem:[%s2408_s3 + $0x580] sm:$0xff] }
  0x47   :  { %620 = vmatpush.msra.mxu1 %v408_v33  ;;  %595 = vmatpush.msra.mxu0 %v368_v36  ;;  %v476_v12 = vld [vmem:[%s2408_s3 + $0x490] sm:$0xff]  ;;  %v430_v19 = vld [vmem:[%s2408_s3 + $0x320] sm:$0xff] }
  0x48   :  { %567 = vmatpush.msra.mxu3 %v334_v39  ;;  %646 = vmatpush.msra.mxu2 %v446_v52  ;;  %v508_v13 = vld [vmem:[%s2408_s3 + $0x590] sm:$0xff]  ;;  %v542_v22 = vld [vmem:[%s2408_s3 + $0x6a0] sm:$0xff]  ;;  %v359_v39 = vld [vmem:[%s2408_s3 + $0xe8] sm:$0xff] }
  0x49   :  { %621 = vmatpush.msra.mxu1 %v406_v37  ;;  %v432_v15 = vld [vmem:[%s2408_s3 + $0x330] sm:$0xff]  ;;  %v470_v24 = vld [vmem:[%s2408_s3 + $0x460] sm:$0xff] }
  0x4a   :  { %568 = vmatpush.msra.mxu3 %v332_v43  ;;  %647 = vmatpush.msra.mxu2 %v444_v56  ;;  %v544_v18 = vld [vmem:[%s2408_s3 + $0x6b0] sm:$0xff]  ;;  %v502_v26 = vld [vmem:[%s2408_s3 + $0x560] sm:$0xff] }
  0x4b   :  { %622 = vmatpush.msra.mxu1 %v404_v41  ;;  %v472_v20 = vld [vmem:[%s2408_s3 + $0x470] sm:$0xff]  ;;  %v426_v28 = vld [vmem:[%s2408_s3 + $0x300] sm:$0xff] }
  0x4c   :  { %1135 = vmatmul.msk.f32.gmra.mxu1 %vm114_vm0, %v1365_v40  ;;  %1139 = vmatmul.msk.f32.gmra.mxu2 %vm114_vm0, %v1365_v40  ;;  %v366_v40 = vld [vmem:[%s2408_s3 + $0x120] sm:$0xff]  ;;  %v504_v21 = vld [vmem:[%s2408_s3 + $0x570] sm:$0xff] }
  0x4d   :  { %596 = vmatpush.msra.mxu0 %v366_v40  ;;  %623 = vmatpush.msra.mxu1 %v402_v45  ;;  %v428_v23 = vld [vmem:[%s2408_s3 + $0x310] sm:$0xff]  ;;  %v538_v25 = vld [vmem:[%s2408_s3 + $0x680] sm:$0xff] }
  0x4e   :  { %569 = vmatpush.msra.mxu3 %v330_v47  ;;  %648 = vmatpush.msra.mxu2 %v442_v60  ;;  %v540_v27 = vld [vmem:[%s2408_s3 + $0x690] sm:$0xff]  ;;  %v466_v31 = vld [vmem:[%s2408_s3 + $0x440] sm:$0xff] }
  0x4f   :  { %597 = vmatpush.msra.mxu0 %v364_v44  ;;  %624 = vmatpush.msra.mxu1 %v400_v49  ;;  %v468_v29 = vld [vmem:[%s2408_s3 + $0x450] sm:$0xff]  ;;  %v498_v32 = vld [vmem:[%s2408_s3 + $0x540] sm:$0xff] }
  0x50   :  { %670 = vmatpush.msrb.mxu3 %v488_v53  ;;  %649 = vmatpush.msra.mxu2 %v440_v63  ;;  %v500_v30 = vld [vmem:[%s2408_s3 + $0x550] sm:$0xff]  ;;  %v534_v38 = vld [vmem:[%s2408_s3 + $0x660] sm:$0xff] }
  0x51   :  { %598 = vmatpush.msra.mxu0 %v362_v48  ;;  %625 = vmatpush.msra.mxu1 %v398_v51  ;;  %v536_v33 = vld [vmem:[%s2408_s3 + $0x670] sm:$0xff]  ;;  %v462_v41 = vld [vmem:[%s2408_s3 + $0x420] sm:$0xff]  ;;  %v355_v51 = vld [vmem:[%s2408_s3 + $0xc8] sm:$0xff] }
  0x52   :  { %671 = vmatpush.msrb.mxu3 %v486_v57  ;;  %650 = vmatpush.msra.mxu2 %v438_v3  ;;  %v464_v35 = vld [vmem:[%s2408_s3 + $0x430] sm:$0xff]  ;;  %v494_v42 = vld [vmem:[%s2408_s3 + $0x520] sm:$0xff]  ;;  %v349_v3 = vld [vmem:[%s2408_s3 + $0x98] sm:$0xff] }
  0x53   :  { %699 = vmatpush.msrb.mxu0 %v520_v54  ;;  %626 = vmatpush.msra.mxu1 %v396_v55  ;;  %v496_v37 = vld [vmem:[%s2408_s3 + $0x530] sm:$0xff]  ;;  %v530_v50 = vld [vmem:[%s2408_s3 + $0x640] sm:$0xff]  ;;  %v353_v55 = vld [vmem:[%s2408_s3 + $0xb8] sm:$0xff] }
  0x54   :  { %672 = vmatpush.msrb.mxu3 %v484_v61  ;;  %651 = vmatpush.msra.mxu2 %v436_v7  ;;  %v532_v43 = vld [vmem:[%s2408_s3 + $0x650] sm:$0xff]  ;;  %v458_v52 = vld [vmem:[%s2408_s3 + $0x400] sm:$0xff]  ;;  %v351_v61 = vld [vmem:[%s2408_s3 + $0xa8] sm:$0xff] }
  0x55   :  { %700 = vmatpush.msrb.mxu0 %v518_v58  ;;  %627 = vmatpush.msra.mxu1 %v394_v59  ;;  %v460_v48 = vld [vmem:[%s2408_s3 + $0x410] sm:$0xff]  ;;  %v490_v53 = vld [vmem:[%s2408_s3 + $0x500] sm:$0xff]  ;;  %v393_v58 = vld [vmem:[%s2408_s3 + $0x1f8] sm:$0xff] }
  0x56   :  { %673 = vmatpush.msrb.mxu3 %v482_v0  ;;  %652 = vmatpush.msra.mxu2 %v434_v11  ;;  %v492_v49 = vld [vmem:[%s2408_s3 + $0x510] sm:$0xff]  ;;  %v526_v57 = vld [vmem:[%s2408_s3 + $0x620] sm:$0xff]  ;;  %v425_v59 = vld [vmem:[%s2408_s3 + $0x2f8] sm:$0xff] }
  0x57   :  { %701 = vmatpush.msrb.mxu0 %v516_v62  ;;  %728 = vmatpush.msrb.mxu1 %v552_v2  ;;  %v528_v54 = vld [vmem:[%s2408_s3 + $0x630] sm:$0xff]  ;;  %v389_v11 = vld [vmem:[%s2408_s3 + $0x1d8] sm:$0xff] }
  0x58   :  { %674 = vmatpush.msrb.mxu3 %v480_v4  ;;  %653 = vmatpush.msra.mxu2 %v432_v15  ;;  %v391_v4 = vld [vmem:[%s2408_s3 + $0x1e8] sm:$0xff] }
  0x59   :  { %702 = vmatpush.msrb.mxu0 %v514_v1  ;;  %729 = vmatpush.msrb.mxu1 %v550_v6  ;;  %v524_v1 = vld [vmem:[%s2408_s3 + $0x610] sm:$0xff]  ;;  %v522_v6 = vld [vmem:[%s2408_s3 + $0x600] sm:$0xff]  ;;  %v387_v15 = vld [vmem:[%s2408_s3 + $0x1c8] sm:$0xff] }
  0x5a   :  { %675 = vmatpush.msrb.mxu3 %v478_v8  ;;  %654 = vmatpush.msra.mxu2 %v430_v19  ;;  %v423_v8 = vld [vmem:[%s2408_s3 + $0x2e8] sm:$0xff] }
  0x5b   :  { %703 = vmatpush.msrb.mxu0 %v512_v5  ;;  %730 = vmatpush.msrb.mxu1 %v548_v10  ;;  %v343_v19 = vld [vmem:[%s2408_s3 + $0x68] sm:$0xff] }
  0x5c   :  { %676 = vmatpush.msrb.mxu3 %v476_v12  ;;  %655 = vmatpush.msra.mxu2 %v428_v23  ;;  %v421_v12 = vld [vmem:[%s2408_s3 + $0x2d8] sm:$0xff] }
  0x5d   :  { %704 = vmatpush.msrb.mxu0 %v510_v9  ;;  %731 = vmatpush.msrb.mxu1 %v546_v14  ;;  %v347_v9 = vld [vmem:[%s2408_s3 + $0x88] sm:$0xff]  ;;  %v457_v14 = vld [vmem:[%s2408_s3 + $0x3f8] sm:$0xff] }
  0x5e   :  { %677 = vmatpush.msrb.mxu3 %v474_v16  ;;  %656 = vmatpush.msra.mxu2 %v426_v28  ;;  %v455_v16 = vld [vmem:[%s2408_s3 + $0x3e8] sm:$0xff]  ;;  %v385_v23 = vld [vmem:[%s2408_s3 + $0x1b8] sm:$0xff] }
  0x5f   :  { %705 = vmatpush.msrb.mxu0 %v508_v13  ;;  %732 = vmatpush.msrb.mxu1 %v544_v18  ;;  %v345_v13 = vld [vmem:[%s2408_s3 + $0x78] sm:$0xff]  ;;  %v419_v18 = vld [vmem:[%s2408_s3 + $0x2c8] sm:$0xff] }
  0x60   :  { %678 = vmatpush.msrb.mxu3 %v472_v20  ;;  %757 = vmatpush.msrb.mxu2 %v361_v34 }
  0x61   :  { %706 = vmatpush.msrb.mxu0 %v506_v17  ;;  %733 = vmatpush.msrb.mxu1 %v542_v22 }
  0x62   :  { %679 = vmatpush.msrb.mxu3 %v470_v24  ;;  %758 = vmatpush.msrb.mxu2 %v359_v39  ;;  %v417_v24 = vld [vmem:[%s2408_s3 + $0x2b8] sm:$0xff]  ;;  %v411_v39 = vld [vmem:[%s2408_s3 + $0x288] sm:$0xff] }
  0x63   :  { %707 = vmatpush.msrb.mxu0 %v504_v21  ;;  %734 = vmatpush.msrb.mxu1 %v540_v27  ;;  %v341_v27 = vld [vmem:[%s2408_s3 + $0x58] sm:$0xff] }
  0x64   :  { %680 = vmatpush.msrb.mxu3 %v468_v29  ;;  %759 = vmatpush.msrb.mxu2 %v357_v46  ;;  %v383_v29 = vld [vmem:[%s2408_s3 + $0x1a8] sm:$0xff]  ;;  %v449_v46 = vld [vmem:[%s2408_s3 + $0x3b8] sm:$0xff] }
  0x65   :  { %708 = vmatpush.msrb.mxu0 %v502_v26  ;;  %735 = vmatpush.msrb.mxu1 %v538_v25  ;;  %v453_v25 = vld [vmem:[%s2408_s3 + $0x3d8] sm:$0xff] }
  0x66   :  { %681 = vmatpush.msrb.mxu3 %v466_v31  ;;  %760 = vmatpush.msrb.mxu2 %v355_v51  ;;  %v339_v31 = vld [vmem:[%s2408_s3 + $0x48] sm:$0xff] }
  0x67   :  { %709 = vmatpush.msrb.mxu0 %v500_v30  ;;  %736 = vmatpush.msrb.mxu1 %v536_v33  ;;  %v415_v30 = vld [vmem:[%s2408_s3 + $0x2a8] sm:$0xff]  ;;  %v413_v33 = vld [vmem:[%s2408_s3 + $0x298] sm:$0xff] }
  0x68   :  { %682 = vmatpush.msrb.mxu3 %v464_v35  ;;  %761 = vmatpush.msrb.mxu2 %v353_v55  ;;  %v451_v35 = vld [vmem:[%s2408_s3 + $0x3c8] sm:$0xff]  ;;  %v333_v55 = vld [vmem:[%s2408_s3 + $0x18] sm:$0xff] }
  0x69   :  { %710 = vmatpush.msrb.mxu0 %v498_v32  ;;  %737 = vmatpush.msrb.mxu1 %v534_v38  ;;  %v381_v32 = vld [vmem:[%s2408_s3 + $0x198] sm:$0xff]  ;;  %v379_v38 = vld [vmem:[%s2408_s3 + $0x188] sm:$0xff] }
  0x6a   :  { %683 = vmatpush.msrb.mxu3 %v462_v41  ;;  %762 = vmatpush.msrb.mxu2 %v351_v61  ;;  %v405_v61 = vld [vmem:[%s2408_s3 + $0x258] sm:$0xff] }
  0x6b   :  { %711 = vmatpush.msrb.mxu0 %v496_v37  ;;  %738 = vmatpush.msrb.mxu1 %v532_v43  ;;  %v337_v37 = vld [vmem:[%s2408_s3 + $0x38] sm:$0xff] }
  0x6c   :  { %684 = vmatpush.msrb.mxu3 %v460_v48  ;;  %763 = vmatpush.msrb.mxu2 %v349_v3 }
  0x6d   :  { %712 = vmatpush.msrb.mxu0 %v494_v42  ;;  %739 = vmatpush.msrb.mxu1 %v530_v50  ;;  %v335_v50 = vld [vmem:[%s2408_s3 + $0x28] sm:$0xff] }
  0x6e   :  { %685 = vmatpush.msrb.mxu3 %v458_v52  ;;  %764 = vmatpush.msrb.mxu2 %v347_v9  ;;  %v377_v52 = vld [vmem:[%s2408_s3 + $0x178] sm:$0xff] }
  0x6f   :  { %713 = vmatpush.msrb.mxu0 %v492_v49  ;;  %740 = vmatpush.msrb.mxu1 %v528_v54  ;;  %v447_v54 = vld [vmem:[%s2408_s3 + $0x3a8] sm:$0xff] }
  0x70   :  { %765 = vmatpush.msrb.mxu2 %v345_v13  ;;  %v403_v13 = vld [vmem:[%s2408_s3 + $0x248] sm:$0xff] }
  0x71   :  { %714 = vmatpush.msrb.mxu0 %v490_v53  ;;  %741 = vmatpush.msrb.mxu1 %v526_v57  ;;  %v409_v53 = vld [vmem:[%s2408_s3 + $0x278] sm:$0xff]  ;;  %v407_v57 = vld [vmem:[%s2408_s3 + $0x268] sm:$0xff] }
  0x72   :  { %766 = vmatpush.msrb.mxu2 %v343_v19  ;;  %v487_v19 = vld [vmem:[%s2408_s3 + $0x4e8] sm:$0xff] }
  0x73   :  { %742 = vmatpush.msrb.mxu1 %v524_v1 }
  0x74   :  { %767 = vmatpush.msrb.mxu2 %v341_v27 }
  0x75   :  { %743 = vmatpush.msrb.mxu1 %v522_v6 }
  0x76   :  { %768 = vmatpush.msrb.mxu2 %v339_v31 }
  0x78   :  { %769 = vmatpush.msrb.mxu2 %v337_v37  ;;  %v435_v37 = vld [vmem:[%s2408_s3 + $0x348] sm:$0xff] }
  0x7a   :  { %770 = vmatpush.msrb.mxu2 %v335_v50  ;;  %v431_v50 = vld [vmem:[%s2408_s3 + $0x328] sm:$0xff] }
  0x7c   :  { %771 = vmatpush.msrb.mxu2 %v333_v55 }
  0x87   :  { %v1784_v36 = vpop.permute.xlu0 %96 }
  0x8b   :  { %v1882_v10 = vpop.permute.xlu1 %106 }
  0x8f   :  { %v144_v40 = vpop.f32.mrf.mxu0 }
  0x90   :  { %v1805_v44 = vadd.f32 %v144_v40, %v1784_v36  ;;  %v173_v45 = vpop.f32.mrf.mxu1  ;;  %v1851_v62 = vpop.permute.xlu0 %101 }
  0x91   :  { %v1811_v47 = vadd.f32 %v173_v45, %v1784_v36 }
  0x92   :  { %570 = vmatmul.f32.vlgmr.msra.gmra.mxu3 %v1805_v44 }
  0x93   :  { %599 = vmatmul.f32.vlgmr.msra.gmra.mxu0 %v1811_v47  ;;  %786 = vmatpush.msra.mxu3 %v393_v58  ;;  %v445_v58 = vld [vmem:[%s2408_s3 + $0x398] sm:$0xff] }
  0x94   :  { %815 = vmatpush.msra.mxu0 %v425_v59  ;;  %v331_v59 = vld [vmem:[%s2408_s3 + $0x8] sm:$0xff] }
  0x95   :  { %v150_v56 = vpop.f32.mrf.mxu3  ;;  %787 = vmatpush.msra.mxu3 %v391_v4  ;;  %772 = vmatpush.msrb.mxu2 %v331_v59 }
  0x96   :  { %v202_v60 = vpop.f32.mrf.mxu2  ;;  %816 = vmatpush.msra.mxu0 %v423_v8  ;;  %v1913_v22 = vadd.f32 %v150_v56, %v1882_v10  ;;  %v375_v56 = vld [vmem:[%s2408_s3 + $0x168] sm:$0xff] }
  0x97   :  { %v1854_v63 = vadd.f32 %v202_v60, %v1784_v36  ;;  %v147_v0 = vpop.f32.mrf.mxu0  ;;  %788 = vmatpush.msra.mxu3 %v389_v11  ;;  %v373_v60 = vld [vmem:[%s2408_s3 + $0x158] sm:$0xff]  ;;  %v371_v11 = vld [vmem:[%s2408_s3 + $0x148] sm:$0xff] }
  0x98   :  { %v1860_v2 = vadd.f32 %v147_v0, %v1851_v62  ;;  %817 = vmatpush.msra.mxu0 %v421_v12 }
  0x99   :  { %v176_v5 = vpop.f32.mrf.mxu1  ;;  %628 = vmatmul.f32.vlgmr.msra.gmra.mxu1 %v1854_v63  ;;  %789 = vmatpush.msra.mxu3 %v387_v15  ;;  %v1948_v34 = vpop.permute.xlu1 %111  ;;  %v489_v15 = vld [vmem:[%s2408_s3 + $0x4f8] sm:$0xff] }
  0x9a   :  { %v1873_v7 = vadd.f32 %v176_v5, %v1851_v62  ;;  %573 = vmatmul.f32.gmra.mxu3 %v1860_v2  ;;  %844 = vmatpush.msra.mxu1 %v457_v14  ;;  %v443_v5 = vld [vmem:[%s2408_s3 + $0x388] sm:$0xff]  ;;  %v441_v14 = vld [vmem:[%s2408_s3 + $0x378] sm:$0xff] }
  0x9b   :  { %818 = vmatpush.msra.mxu0 %v419_v18  ;;  %790 = vmatpush.msra.mxu3 %v385_v23  ;;  %v439_v18 = vld [vmem:[%s2408_s3 + $0x368] sm:$0xff] }
  0x9c   :  { %602 = vmatmul.f32.gmra.mxu0 %v1873_v7  ;;  %845 = vmatpush.msra.mxu1 %v455_v16  ;;  %v369_v16 = vld [vmem:[%s2408_s3 + $0x138] sm:$0xff]  ;;  %v399_v23 = vld [vmem:[%s2408_s3 + $0x228] sm:$0xff] }
  0x9d   :  { %819 = vmatpush.msra.mxu0 %v417_v24  ;;  %791 = vmatpush.msra.mxu3 %v383_v29  ;;  %v437_v24 = vld [vmem:[%s2408_s3 + $0x358] sm:$0xff] }
  0x9e   :  { %v153_v17 = vpop.f32.mrf.mxu3  ;;  %846 = vmatpush.msra.mxu1 %v453_v25  ;;  %v365_v25 = vld [vmem:[%s2408_s3 + $0x118] sm:$0xff] }
  0x9f   :  { %v205_v20 = vpop.f32.mrf.mxu2  ;;  %820 = vmatpush.msra.mxu0 %v415_v30  ;;  %792 = vmatpush.msra.mxu3 %v381_v32  ;;  %v1966_v45 = vadd.f32 %v153_v17, %v1948_v34  ;;  %v401_v17 = vld [vmem:[%s2408_s3 + $0x238] sm:$0xff] }
  0xa0   :  { %v1910_v21 = vadd.f32 %v205_v20, %v1851_v62  ;;  %847 = vmatpush.msra.mxu1 %v451_v35  ;;  %v367_v20 = vld [vmem:[%s2408_s3 + $0x128] sm:$0xff] }
  0xa1   :  { %v179_v26 = vpop.f32.mrf.mxu1  ;;  %821 = vmatpush.msra.mxu0 %v413_v33  ;;  %793 = vmatpush.msra.mxu3 %v379_v38  ;;  %v485_v33 = vld [vmem:[%s2408_s3 + $0x4d8] sm:$0xff] }
  0xa2   :  { %v1925_v28 = vadd.f32 %v179_v26, %v1882_v10  ;;  %631 = vmatmul.f32.gmra.mxu1 %v1910_v21  ;;  %576 = vmatmul.f32.gmra.mxu3 %v1913_v22  ;;  %v260_v40 = vpop.f32.mrf.mxu0 }
  0xa3   :  { %822 = vmatpush.msra.mxu0 %v411_v39  ;;  %848 = vmatpush.msra.mxu1 %v449_v46  ;;  %v2015_v1 = vadd.f32 %v260_v40, %v1784_v36  ;;  %v483_v39 = vld [vmem:[%s2408_s3 + $0x4c8] sm:$0xff]  ;;  %v481_v46 = vld [vmem:[%s2408_s3 + $0x4b8] sm:$0xff] }
  0xa4   :  { %605 = vmatmul.f32.gmra.mxu0 %v1925_v28  ;;  %794 = vmatpush.msra.mxu3 %v377_v52  ;;  %v363_v40 = vld [vmem:[%s2408_s3 + $0x108] sm:$0xff]  ;;  %v553_v52 = vld [vmem:[%s2408_s3 + $0x6f8] sm:$0xff] }
  0xa5   :  { %823 = vmatpush.msra.mxu0 %v409_v53  ;;  %849 = vmatpush.msra.mxu1 %v447_v54 }
  0xa6   :  { %795 = vmatpush.msra.mxu3 %v375_v56 }
  0xa7   :  { %v208_v41 = vpop.f32.mrf.mxu2  ;;  %824 = vmatpush.msra.mxu0 %v407_v57  ;;  %850 = vmatpush.msra.mxu1 %v445_v58  ;;  %v429_v57 = vld [vmem:[%s2408_s3 + $0x318] sm:$0xff] }
  0xa8   :  { %v1963_v42 = vadd.f32 %v208_v41, %v1882_v10  ;;  %v231_v43 = vpop.f32.mrf.mxu3  ;;  %796 = vmatpush.msra.mxu3 %v373_v60  ;;  %v395_v41 = vld [vmem:[%s2408_s3 + $0x208] sm:$0xff] }
  0xa9   :  { %v1972_v48 = vadd.f32 %v231_v43, %v1784_v36  ;;  %v182_v49 = vpop.f32.mrf.mxu1  ;;  %825 = vmatpush.msra.mxu0 %v405_v61  ;;  %851 = vmatpush.msra.mxu1 %v443_v5  ;;  %v433_v43 = vld [vmem:[%s2408_s3 + $0x338] sm:$0xff]  ;;  %v479_v60 = vld [vmem:[%s2408_s3 + $0x4a8] sm:$0xff] }
  0xaa   :  { %v1978_v51 = vadd.f32 %v182_v49, %v1948_v34  ;;  %634 = vmatmul.f32.gmra.mxu1 %v1963_v42  ;;  %579 = vmatmul.f32.gmra.mxu3 %v1966_v45  ;;  %v263_v6 = vpop.f32.mrf.mxu0  ;;  %v521_v49 = vld [vmem:[%s2408_s3 + $0x5f8] sm:$0xff]  ;;  %v427_v5 = vld [vmem:[%s2408_s3 + $0x308] sm:$0xff] }
  0xab   :  { %657 = vmatmul.f32.vlgmr.msra.gmra.mxu2 %v1972_v48  ;;  %797 = vmatpush.msra.mxu3 %v371_v11  ;;  %v2067_v27 = vadd.f32 %v263_v6, %v1851_v62  ;;  %v517_v6 = vld [vmem:[%s2408_s3 + $0x5d8] sm:$0xff] }
  0xac   :  { %608 = vmatmul.f32.gmra.mxu0 %v1978_v51  ;;  %852 = vmatpush.msra.mxu1 %v441_v14  ;;  %v515_v14 = vld [vmem:[%s2408_s3 + $0x5c8] sm:$0xff] }
  0xad   :  { %826 = vmatpush.msra.mxu0 %v403_v13  ;;  %873 = vmatpush.msra.mxu2 %v489_v15  ;;  %v475_v13 = vld [vmem:[%s2408_s3 + $0x488] sm:$0xff] }
  0xae   :  { %798 = vmatpush.msra.mxu3 %v369_v16  ;;  %853 = vmatpush.msra.mxu1 %v439_v18  ;;  %v547_v15 = vld [vmem:[%s2408_s3 + $0x6c8] sm:$0xff] }
  0xaf   :  { %v211_v0 = vpop.f32.mrf.mxu2  ;;  %827 = vmatpush.msra.mxu0 %v401_v17  ;;  %874 = vmatpush.msra.mxu2 %v487_v19  ;;  %v513_v19 = vld [vmem:[%s2408_s3 + $0x5b8] sm:$0xff] }
  0xb0   :  { %v2018_v3 = vadd.f32 %v211_v0, %v1948_v34  ;;  %v234_v4 = vpop.f32.mrf.mxu3  ;;  %799 = vmatpush.msra.mxu3 %v367_v20  ;;  %854 = vmatpush.msra.mxu1 %v437_v24  ;;  %v551_v0 = vld [vmem:[%s2408_s3 + $0x6e8] sm:$0xff] }
  0xb1   :  { %v2024_v8 = vadd.f32 %v234_v4, %v1851_v62  ;;  %v289_v9 = vpop.f32.mrf.mxu1  ;;  %828 = vmatpush.msra.mxu0 %v399_v23  ;;  %875 = vmatpush.msra.mxu2 %v485_v33  ;;  %v477_v4 = vld [vmem:[%s2408_s3 + $0x498] sm:$0xff] }
  0xb2   :  { %v2030_v12 = vadd.f32 %v289_v9, %v1784_v36  ;;  %637 = vmatmul.f32.gmra.mxu1 %v2018_v3  ;;  %686 = vmatmul.f32.vlgmr.msrb.gmra.mxu3 %v2015_v1  ;;  %v266_v38 = vpop.f32.mrf.mxu0  ;;  %v549_v9 = vld [vmem:[%s2408_s3 + $0x6d8] sm:$0xff] }
  0xb3   :  { %660 = vmatmul.f32.gmra.mxu2 %v2024_v8  ;;  %800 = vmatpush.msra.mxu3 %v365_v25  ;;  %v2119_v54 = vadd.f32 %v266_v38, %v1882_v10  ;;  %v473_v23 = vld [vmem:[%s2408_s3 + $0x478] sm:$0xff]  ;;  %v543_v25 = vld [vmem:[%s2408_s3 + $0x6a8] sm:$0xff] }
  0xb4   :  { %715 = vmatmul.f32.vlgmr.msrb.gmra.mxu0 %v2030_v12  ;;  %855 = vmatpush.msra.mxu1 %v435_v37  ;;  %v541_v33 = vld [vmem:[%s2408_s3 + $0x698] sm:$0xff] }
  0xb5   :  { %876 = vmatpush.msra.mxu2 %v483_v39  ;;  %801 = vmatpush.msra.mxu3 %v363_v40  ;;  %v539_v39 = vld [vmem:[%s2408_s3 + $0x688] sm:$0xff] }
  0xb6   :  { %856 = vmatpush.msra.mxu1 %v433_v43  ;;  %v467_v40 = vld [vmem:[%s2408_s3 + $0x448] sm:$0xff]  ;;  %v465_v43 = vld [vmem:[%s2408_s3 + $0x438] sm:$0xff] }
  0xb7   :  { %v318_v26 = vpop.f32.mrf.mxu2  ;;  %877 = vmatpush.msra.mxu2 %v481_v46  ;;  %902 = vmatpush.msrb.mxu3 %v521_v49  ;;  %v535_v46 = vld [vmem:[%s2408_s3 + $0x668] sm:$0xff]  ;;  %v533_v49 = vld [vmem:[%s2408_s3 + $0x658] sm:$0xff] }
  0xb8   :  { %v237_v29 = vpop.f32.mrf.mxu3  ;;  %v2070_v30 = vadd.f32 %v318_v26, %v1784_v36  ;;  %v397_v36 = vld [vmem:[%s2408_s3 + $0x218] sm:$0xff]  ;;  %857 = vmatpush.msra.mxu1 %v431_v50  ;;  %v511_v26 = vld [vmem:[%s2408_s3 + $0x5a8] sm:$0xff] }
  0xb9   :  { %v2076_v31 = vadd.f32 %v237_v29, %v1882_v10  ;;  %v292_v32 = vpop.f32.mrf.mxu1  ;;  %829 = vmatpush.msra.mxu0 %v397_v36  ;;  %878 = vmatpush.msra.mxu2 %v479_v60  ;;  %v471_v29 = vld [vmem:[%s2408_s3 + $0x468] sm:$0xff] }
  0xba   :  { %v2082_v35 = vadd.f32 %v292_v32, %v1851_v62  ;;  %744 = vmatmul.f32.vlgmr.msrb.gmra.mxu1 %v2070_v30  ;;  %689 = vmatmul.f32.gmra.mxu3 %v2067_v27  ;;  %v269_v11 = vpop.f32.mrf.mxu0  ;;  %v509_v32 = vld [vmem:[%s2408_s3 + $0x598] sm:$0xff]  ;;  %v507_v36 = vld [vmem:[%s2408_s3 + $0x588] sm:$0xff] }
  0xbb   :  { %663 = vmatmul.f32.gmra.mxu2 %v2076_v31  ;;  %830 = vmatpush.msra.mxu0 %v395_v41  ;;  %v2168_v17 = vadd.f32 %v269_v11, %v1948_v34  ;;  %v537_v41 = vld [vmem:[%s2408_s3 + $0x678] sm:$0xff]  ;;  %v499_v50 = vld [vmem:[%s2408_s3 + $0x548] sm:$0xff]  ;;  %v976_v11 = vld [vmem:[%s2410_s5] sm:$0xff] }
  0xbc   :  { %718 = vmatmul.f32.gmra.mxu0 %v2082_v35  ;;  %858 = vmatpush.msra.mxu1 %v429_v57  ;;  %v459_v57 = vld [vmem:[%s2408_s3 + $0x408] sm:$0xff] }
  0xbd   :  { %931 = vmatpush.msrb.mxu0 %v553_v52  ;;  %879 = vmatpush.msra.mxu2 %v477_v4  ;;  %v461_v52 = vld [vmem:[%s2408_s3 + $0x418] sm:$0xff]  ;;  %v491_v60 = vld [vmem:[%s2408_s3 + $0x508] sm:$0xff]  ;;  %v978_v4 = vld [vmem:[%s2410_s5 + $0x10] sm:$0xff] }
  0xbe   :  { %859 = vmatpush.msra.mxu1 %v427_v5 }
  0xbf   :  { %v321_v53 = vpop.f32.mrf.mxu2  ;;  %932 = vmatpush.msrb.mxu0 %v551_v0  ;;  %880 = vmatpush.msra.mxu2 %v475_v13  ;;  %v979_v0 = vld [vmem:[%s2410_s5 + $0x18] sm:$0xff] }
  0xc0   :  { %v240_v55 = vpop.f32.mrf.mxu3  ;;  %v2122_v56 = vadd.f32 %v321_v53, %v1851_v62  ;;  %v519_v62 = vld [vmem:[%s2408_s3 + $0x5e8] sm:$0xff] }
  0xc1   :  { %v2128_v58 = vadd.f32 %v240_v55, %v1948_v34  ;;  %v295_v59 = vpop.f32.mrf.mxu1  ;;  %903 = vmatpush.msrb.mxu3 %v519_v62  ;;  %933 = vmatpush.msrb.mxu0 %v549_v9  ;;  %v531_v53 = vld [vmem:[%s2408_s3 + $0x648] sm:$0xff]  ;;  %v497_v55 = vld [vmem:[%s2408_s3 + $0x538] sm:$0xff] }
  0xc2   :  { %v2134_v61 = vadd.f32 %v295_v59, %v1882_v10  ;;  %747 = vmatmul.f32.gmra.mxu1 %v2122_v56  ;;  %692 = vmatmul.f32.gmra.mxu3 %v2119_v54  ;;  %v525_v59 = vld [vmem:[%s2408_s3 + $0x618] sm:$0xff]  ;;  %v523_v62 = vld [vmem:[%s2408_s3 + $0x608] sm:$0xff] }
  0xc3   :  { %666 = vmatmul.f32.gmra.mxu2 %v2128_v58  ;;  %904 = vmatpush.msrb.mxu3 %v517_v6  ;;  %v977_v6 = vld [vmem:[%s2410_s5 + $0x8] sm:$0xff] }
  0xc4   :  { %721 = vmatmul.f32.gmra.mxu0 %v2134_v61  ;;  %881 = vmatpush.msra.mxu2 %v473_v23 }
  0xc5   :  { %905 = vmatpush.msrb.mxu3 %v515_v14  ;;  %934 = vmatpush.msrb.mxu0 %v547_v15 }
  0xc6   :  { %882 = vmatpush.msra.mxu2 %v471_v29 }
  0xc7   :  { %v324_v16 = vpop.f32.mrf.mxu2  ;;  %906 = vmatpush.msrb.mxu3 %v513_v19 }
  0xc8   :  { %v2171_v18 = vadd.f32 %v324_v16, %v1882_v10  ;;  %v545_v10 = vld [vmem:[%s2408_s3 + $0x6b8] sm:$0xff] }
  0xc9   :  { %v298_v20 = vpop.f32.mrf.mxu1  ;;  %935 = vmatpush.msrb.mxu0 %v545_v10  ;;  %907 = vmatpush.msrb.mxu3 %v511_v26 }
  0xca   :  { %v2180_v24 = vadd.f32 %v298_v20, %v1948_v34  ;;  %750 = vmatmul.f32.gmra.mxu1 %v2171_v18  ;;  %695 = vmatmul.f32.gmra.mxu3 %v2168_v17 }
  0xcb   :  { %773 = vmatmul.f32.vlgmr.msrb.gmra.mxu2 %v1805_v44  ;;  %v469_v44 = vld [vmem:[%s2408_s3 + $0x458] sm:$0xff]  ;;  %936 = vmatpush.msrb.mxu0 %v543_v25 }
  0xcc   :  { %724 = vmatmul.f32.gmra.mxu0 %v2180_v24  ;;  %908 = vmatpush.msrb.mxu3 %v509_v32 }
  0xcd   :  { %883 = vmatpush.msra.mxu2 %v469_v44  ;;  %937 = vmatpush.msrb.mxu0 %v541_v33 }
  0xce   :  { %909 = vmatpush.msrb.mxu3 %v507_v36  ;;  %v960_v36 = vld [vmem:[%s2409_s4] sm:$0xff] }
  0xcf   :  { %v327_v37 = vpop.f32.mrf.mxu2  ;;  %938 = vmatpush.msrb.mxu0 %v539_v39  ;;  %884 = vmatpush.msra.mxu2 %v467_v40 }
  0xd0   :  { %v2211_v38 = vadd.f32 %v327_v37, %v1948_v34  ;;  %v505_v34 = vld [vmem:[%s2408_s3 + $0x578] sm:$0xff] }
  0xd1   :  { %910 = vmatpush.msrb.mxu3 %v505_v34  ;;  %939 = vmatpush.msrb.mxu0 %v537_v41 }
  0xd2   :  { %753 = vmatmul.f32.gmra.mxu1 %v2211_v38  ;;  %802 = vmatmul.f32.vlgmr.msra.gmra.mxu3 %v1811_v47  ;;  %v503_v47 = vld [vmem:[%s2408_s3 + $0x568] sm:$0xff] }
  0xd3   :  { %776 = vmatmul.f32.gmra.mxu2 %v1860_v2  ;;  %v463_v2 = vld [vmem:[%s2408_s3 + $0x428] sm:$0xff]  ;;  %911 = vmatpush.msrb.mxu3 %v503_v47 }
  0xd4   :  { %831 = vmatmul.f32.vlgmr.msra.gmra.mxu0 %v1854_v63  ;;  %885 = vmatpush.msra.mxu2 %v465_v43  ;;  %v501_v63 = vld [vmem:[%s2408_s3 + $0x558] sm:$0xff] }
  0xd5   :  { %940 = vmatpush.msrb.mxu0 %v535_v46  ;;  %912 = vmatpush.msrb.mxu3 %v501_v63 }
  0xd6   :  { %886 = vmatpush.msra.mxu2 %v463_v2 }
  0xd7   :  { %941 = vmatpush.msrb.mxu0 %v533_v49  ;;  %913 = vmatpush.msrb.mxu3 %v499_v50  ;;  %v962_v50 = vld [vmem:[%s2409_s4 + $0x10] sm:$0xff] }
  0xd8   :  { %887 = vmatpush.msra.mxu2 %v461_v52 }
  0xd9   :  { %942 = vmatpush.msrb.mxu0 %v531_v53  ;;  %914 = vmatpush.msrb.mxu3 %v497_v55 }
  0xda   :  { %860 = vmatmul.f32.vlgmr.msra.gmra.mxu1 %v1972_v48  ;;  %805 = vmatmul.f32.gmra.mxu3 %v1873_v7  ;;  %v529_v7 = vld [vmem:[%s2408_s3 + $0x638] sm:$0xff]  ;;  %v495_v48 = vld [vmem:[%s2408_s3 + $0x528] sm:$0xff] }
  0xdb   :  { %779 = vmatmul.f32.gmra.mxu2 %v1913_v22  ;;  %v527_v22 = vld [vmem:[%s2408_s3 + $0x628] sm:$0xff]  ;;  %943 = vmatpush.msrb.mxu0 %v529_v7 }
  0xdc   :  { %834 = vmatmul.f32.gmra.mxu0 %v1910_v21  ;;  %888 = vmatpush.msra.mxu2 %v459_v57  ;;  %v493_v21 = vld [vmem:[%s2408_s3 + $0x518] sm:$0xff] }
  0xdd   :  { %915 = vmatpush.msrb.mxu3 %v495_v48  ;;  %944 = vmatpush.msrb.mxu0 %v527_v22 }
  0xdf   :  { %916 = vmatpush.msrb.mxu3 %v493_v21  ;;  %945 = vmatpush.msrb.mxu0 %v525_v59 }
  0xe1   :  { %917 = vmatpush.msrb.mxu3 %v491_v60  ;;  %946 = vmatpush.msrb.mxu0 %v523_v62 }
  0xe2   :  { %863 = vmatmul.f32.gmra.mxu1 %v2024_v8  ;;  %808 = vmatmul.f32.gmra.mxu3 %v1925_v28  ;;  %v991_v28 = vld [vmem:[%s2410_s5 + $0x78] sm:$0xff]  ;;  %v985_v8 = vld [vmem:[%s2410_s5 + $0x48] sm:$0xff] }
  0xe3   :  { %782 = vmatmul.f32.gmra.mxu2 %v1966_v45  ;;  %1009 = vmatpush.msrb.mxu1 %v991_v28  ;;  %v989_v45 = vld [vmem:[%s2410_s5 + $0x68] sm:$0xff]  ;;  %v964_v28 = vld [vmem:[%s2409_s4 + $0x20] sm:$0xff] }
  0xe4   :  { %837 = vmatmul.f32.gmra.mxu0 %v1963_v42  ;;  %v990_v42 = vld [vmem:[%s2410_s5 + $0x70] sm:$0xff] }
  0xe5   :  { %1010 = vmatpush.msrb.mxu1 %v990_v42 }
  0xe7   :  { %1011 = vmatpush.msrb.mxu1 %v989_v45 }
  0xea   :  { %866 = vmatmul.f32.gmra.mxu1 %v2076_v31  ;;  %811 = vmatmul.f32.gmra.mxu3 %v1978_v51  ;;  %v988_v51 = vld [vmem:[%s2410_s5 + $0x60] sm:$0xff]  ;;  %v982_v31 = vld [vmem:[%s2410_s5 + $0x30] sm:$0xff] }
  0xeb   :  { %889 = vmatmul.f32.vlgmr.msra.gmra.mxu2 %v2015_v1  ;;  %1012 = vmatpush.msrb.mxu1 %v988_v51  ;;  %v987_v1 = vld [vmem:[%s2410_s5 + $0x58] sm:$0xff] }
  0xec   :  { %840 = vmatmul.f32.gmra.mxu0 %v2018_v3  ;;  %v986_v3 = vld [vmem:[%s2410_s5 + $0x50] sm:$0xff] }
  0xed   :  { %1013 = vmatpush.msrb.mxu1 %v987_v1 }
  0xef   :  { %1014 = vmatpush.msrb.mxu1 %v986_v3 }
  0xf1   :  { %1015 = vmatpush.msrb.mxu1 %v985_v8 }
  0xf2   :  { %869 = vmatmul.f32.gmra.mxu1 %v2128_v58  ;;  %918 = vmatmul.f32.vlgmr.msrb.gmra.mxu3 %v2030_v12  ;;  %v984_v12 = vld [vmem:[%s2410_s5 + $0x40] sm:$0xff] }
  0xf3   :  { %892 = vmatmul.f32.gmra.mxu2 %v2067_v27  ;;  %1016 = vmatpush.msrb.mxu1 %v984_v12  ;;  %v980_v58 = vld [vmem:[%s2410_s5 + $0x20] sm:$0xff] }
  0xf4   :  { %947 = vmatmul.f32.vlgmr.msrb.gmra.mxu0 %v2070_v30  ;;  %v983_v30 = vld [vmem:[%s2410_s5 + $0x38] sm:$0xff] }
  0xf5   :  { %1017 = vmatpush.msrb.mxu1 %v983_v30 }
  0xf7   :  { %1018 = vmatpush.msrb.mxu1 %v982_v31 }
  0xfa   :  { %921 = vmatmul.f32.gmra.mxu3 %v2082_v35 }
  0xfb   :  { %895 = vmatmul.f32.gmra.mxu2 %v2119_v54  ;;  %v981_v54 = vld [vmem:[%s2410_s5 + $0x28] sm:$0xff] }
  0xfc   :  { %950 = vmatmul.f32.gmra.mxu0 %v2122_v56  ;;  %1019 = vmatpush.msrb.mxu1 %v981_v54 }
  0xfe   :  { %1020 = vmatpush.msrb.mxu1 %v980_v58 }
 0x100   :  { %1021 = vmatpush.msrb.mxu1 %v979_v0  ;;  %v995_v0 = vld [vmem:[%s2410_s5 + $0x98] sm:$0xff] }
 0x101   :  { %1050 = vmatpush.msrb.mxu2 %v995_v0 }
 0x102   :  { %924 = vmatmul.f32.gmra.mxu3 %v2134_v61  ;;  %1022 = vmatpush.msrb.mxu1 %v978_v4 }
 0x103   :  { %898 = vmatmul.f32.gmra.mxu2 %v2168_v17 }
 0x104   :  { %953 = vmatmul.f32.gmra.mxu0 %v2171_v18  ;;  %1023 = vmatpush.msrb.mxu1 %v977_v6  ;;  %v993_v6 = vld [vmem:[%s2410_s5 + $0x88] sm:$0xff] }
 0x106   :  { %1024 = vmatpush.msrb.mxu1 %v976_v11  ;;  %v992_v11 = vld [vmem:[%s2410_s5 + $0x80] sm:$0xff] }
 0x10a   :  { %927 = vmatmul.f32.gmra.mxu3 %v2180_v24 }
 0x10c   :  { %956 = vmatmul.f32.gmra.mxu0 %v2211_v38 }
 0x110   :  { %v600_v27 = vpop.f32.mrf.mxu0 }
 0x115   :  { %v571_v35 = vpop.f32.mrf.mxu3 }
 0x116   :  { %v629_v56 = vpop.f32.mrf.mxu1  ;;  %v601_v18 = vadd.f32 %v600_v27, %v571_v35  ;;  %v966_v35 = vld [vmem:[%s2409_s4 + $0x30] sm:$0xff] }
 0x118   :  { %v630_v24 = vadd.f32 %v629_v56, %v601_v18 }
 0x119   :  { %v603_v61 = vpop.f32.mrf.mxu0 }
 0x11d   :  { %v574_v5 = vpop.f32.mrf.mxu3 }
 0x11e   :  { %v604_v29 = vadd.f32 %v603_v61, %v574_v5  ;;  %v994_v5 = vld [vmem:[%s2410_s5 + $0x90] sm:$0xff] }
 0x11f   :  { %v632_v9 = vpop.f32.mrf.mxu1  ;;  %1051 = vmatpush.msrb.mxu2 %v994_v5 }
 0x120   :  { %v633_v38 = vadd.f32 %v632_v9, %v604_v29 }
 0x121   :  { %v606_v13 = vpop.f32.mrf.mxu0  ;;  %1052 = vmatpush.msrb.mxu2 %v993_v6 }
 0x123   :  { %1053 = vmatpush.msrb.mxu2 %v992_v11 }
 0x125   :  { %v577_v14 = vpop.f32.mrf.mxu3 }
 0x126   :  { %v607_v43 = vadd.f32 %v606_v13, %v577_v14 }
 0x127   :  { %v635_v15 = vpop.f32.mrf.mxu1 }
 0x128   :  { %v636_v52 = vadd.f32 %v635_v15, %v607_v43 }
 0x129   :  { %v609_v16 = vpop.f32.mrf.mxu0 }
 0x12d   :  { %v580_v17 = vpop.f32.mrf.mxu3 }
 0x12e   :  { %v658_v19 = vpop.f32.mrf.mxu2  ;;  %v610_v48 = vadd.f32 %v609_v16, %v580_v17 }
 0x12f   :  { %v638_v20 = vpop.f32.mrf.mxu1  ;;  %v659_v10 = vadd.f32 %v658_v19, %v630_v24 }
 0x130   :  { %v639_v42 = vadd.f32 %v638_v20, %v610_v48 }
 0x131   :  { %v716_v23 = vpop.f32.mrf.mxu0 }
 0x135   :  { %v687_v26 = vpop.f32.mrf.mxu3 }
 0x136   :  { %v661_v25 = vpop.f32.mrf.mxu2  ;;  %v688_v32 = vadd.f32 %v687_v26, %v659_v10 }
 0x137   :  { %v745_v44 = vpop.f32.mrf.mxu1  ;;  %v662_v40 = vadd.f32 %v661_v25, %v633_v38  ;;  %v961_v38 = vld [vmem:[%s2409_s4 + $0x8] sm:$0xff] }
 0x138   :  { %v717_v33 = vadd.f32 %v716_v23, %v688_v32 }
 0x139   :  { %v719_v37 = vpop.f32.mrf.mxu0 }
 0x13a   :  { %v746_v39 = vadd.f32 %v745_v44, %v717_v33 }
 0x13c   :  { %v968_v34 = vmul.f32 %v960_v36, %v746_v39 }
 0x13d   :  { %v690_v41 = vpop.f32.mrf.mxu3 }
 0x13e   :  { %v664_v47 = vpop.f32.mrf.mxu2  ;;  %v691_v46 = vadd.f32 %v690_v41, %v662_v40  ;;  %1025 = vmatmul.f32.vlgmr.msrb.gmra.mxu1 %v968_v34 }
 0x13f   :  { %v748_v2 = vpop.f32.mrf.mxu1  ;;  %v665_v55 = vadd.f32 %v664_v47, %v636_v52  ;;  %v963_v52 = vld [vmem:[%s2409_s4 + $0x18] sm:$0xff] }
 0x140   :  { %v720_v63 = vadd.f32 %v719_v37, %v691_v46 }
 0x141   :  { %v722_v49 = vpop.f32.mrf.mxu0 }
 0x142   :  { %v749_v53 = vadd.f32 %v748_v2, %v720_v63 }
 0x144   :  { %v970_v57 = vmul.f32 %v962_v50, %v749_v53 }
 0x145   :  { %v693_v7 = vpop.f32.mrf.mxu3 }
 0x146   :  { %v667_v22 = vpop.f32.mrf.mxu2  ;;  %v694_v21 = vadd.f32 %v693_v7, %v665_v55  ;;  %1028 = vmatmul.f32.gmra.mxu1 %v970_v57 }
 0x147   :  { %v751_v59 = vpop.f32.mrf.mxu1  ;;  %v668_v51 = vadd.f32 %v667_v22, %v639_v42 }
 0x148   :  { %v723_v60 = vadd.f32 %v722_v49, %v694_v21 }
 0x149   :  { %v725_v62 = vpop.f32.mrf.mxu0 }
 0x14a   :  { %v752_v45 = vadd.f32 %v751_v59, %v723_v60 }
 0x14c   :  { %v972_v1 = vmul.f32 %v964_v28, %v752_v45 }
 0x14d   :  { %v696_v3 = vpop.f32.mrf.mxu3 }
 0x14e   :  { %v774_v8 = vpop.f32.mrf.mxu2  ;;  %v697_v12 = vadd.f32 %v696_v3, %v668_v51  ;;  %1031 = vmatmul.f32.gmra.mxu1 %v972_v1 }
 0x14f   :  { %v754_v30 = vpop.f32.mrf.mxu1 }
 0x150   :  { %v726_v27 = vadd.f32 %v725_v62, %v697_v12  ;;  %v965_v62 = vld [vmem:[%s2409_s4 + $0x28] sm:$0xff] }
 0x151   :  { %v832_v31 = vpop.f32.mrf.mxu0 }
 0x152   :  { %v755_v54 = vadd.f32 %v754_v30, %v726_v27  ;;  %v967_v30 = vld [vmem:[%s2409_s4 + $0x38] sm:$0xff] }
 0x154   :  { %v974_v56 = vmul.f32 %v966_v35, %v755_v54 }
 0x155   :  { %v803_v58 = vpop.f32.mrf.mxu3 }
 0x156   :  { %v777_v61 = vpop.f32.mrf.mxu2  ;;  %1034 = vmatmul.f32.gmra.mxu1 %v974_v56  ;;  %v804_v18 = vadd.f32 %v803_v58, %v774_v8 }
 0x157   :  { %v861_v19 = vpop.f32.mrf.mxu1 }
 0x158   :  { %v833_v23 = vadd.f32 %v832_v31, %v804_v18 }
 0x159   :  { %v835_v4 = vpop.f32.mrf.mxu0 }
 0x15a   :  { %v862_v26 = vadd.f32 %v861_v19, %v833_v23 }
 0x15d   :  { %v806_v9 = vpop.f32.mrf.mxu3 }
 0x15e   :  { %v780_v13 = vpop.f32.mrf.mxu2  ;;  %v807_v29 = vadd.f32 %v806_v9, %v777_v61 }
 0x15f   :  { %v864_v32 = vpop.f32.mrf.mxu1 }
 0x160   :  { %v836_v33 = vadd.f32 %v835_v4, %v807_v29 }
 0x161   :  { %v838_v14 = vpop.f32.mrf.mxu0 }
 0x162   :  { %v865_v40 = vadd.f32 %v864_v32, %v836_v33 }
 0x165   :  { %v809_v15 = vpop.f32.mrf.mxu3 }
 0x166   :  { %v783_v16 = vpop.f32.mrf.mxu2  ;;  %v810_v34 = vadd.f32 %v809_v15, %v780_v13  ;;  %v1067_v15 = vld [vmem:[%s2411_s6] sm:$0x3] }
 0x167   :  { %v867_v49 = vpop.f32.mrf.mxu1 }
 0x168   :  { %v839_v2 = vadd.f32 %v838_v14, %v810_v34 }
 0x169   :  { %v841_v17 = vpop.f32.mrf.mxu0 }
 0x16a   :  { %v868_v55 = vadd.f32 %v867_v49, %v839_v2 }
 0x16d   :  { %v812_v20 = vpop.f32.mrf.mxu3 }
 0x16e   :  { %v890_v24 = vpop.f32.mrf.mxu2  ;;  %v813_v57 = vadd.f32 %v812_v20, %v783_v16  ;;  %v1157_v16 = vld [vmem:[%s2412_s7] ss:$0 sm:$0xff] }
 0x16f   :  { %v891_v25 = vadd.f32 %v890_v24, %v862_v26  ;;  %v870_v42 = vpop.f32.mrf.mxu1 }
 0x170   :  { %v842_v59 = vadd.f32 %v841_v17, %v813_v57 }
 0x171   :  { %v948_v10 = vpop.f32.mrf.mxu0 }
 0x172   :  { %v871_v51 = vadd.f32 %v870_v42, %v842_v59 }
 0x175   :  { %v919_v44 = vpop.f32.mrf.mxu3 }
 0x176   :  { %v893_v36 = vpop.f32.mrf.mxu2  ;;  %v920_v37 = vadd.f32 %v919_v44, %v891_v25 }
 0x177   :  { %v894_v47 = vadd.f32 %v893_v36, %v865_v40 }
 0x178   :  { %v949_v39 = vadd.f32 %v948_v10, %v920_v37 }
 0x179   :  { %v951_v43 = vpop.f32.mrf.mxu0 }
 0x17a   :  { %v969_v41 = vmul.f32 %v961_v38, %v949_v39 }
 0x17c   :  { %1140 = vmatmul.msk.f32.vlgmr.msrb.gmra.mxu2 %vm996_vm1, %v969_v41 }
 0x17d   :  { %v922_v46 = vpop.f32.mrf.mxu3 }
 0x17e   :  { %v923_v63 = vadd.f32 %v922_v46, %v894_v47  ;;  %v896_v50 = vpop.f32.mrf.mxu2 }
 0x17f   :  { %v897_v48 = vadd.f32 %v896_v50, %v868_v55 }
 0x180   :  { %v952_v53 = vadd.f32 %v951_v43, %v923_v63 }
 0x181   :  { %v954_v22 = vpop.f32.mrf.mxu0 }
 0x182   :  { %v971_v7 = vmul.f32 %v963_v52, %v952_v53 }
 0x184   :  { %1141 = vmatmul.msk.f32.gmra.mxu2 %vm996_vm1, %v971_v7 }
 0x185   :  { %v925_v21 = vpop.f32.mrf.mxu3 }
 0x186   :  { %v926_v60 = vadd.f32 %v925_v21, %v897_v48  ;;  %v899_v45 = vpop.f32.mrf.mxu2 }
 0x187   :  { %v900_v3 = vadd.f32 %v899_v45, %v871_v51 }
 0x188   :  { %v955_v28 = vadd.f32 %v954_v22, %v926_v60 }
 0x189   :  { %v957_v27 = vpop.f32.mrf.mxu0 }
 0x18a   :  { %v973_v1 = vmul.f32 %v965_v62, %v955_v28 }
 0x18c   :  { %1142 = vmatmul.msk.f32.gmra.mxu2 %vm996_vm1, %v973_v1 }
 0x18d   :  { %v928_v8 = vpop.f32.mrf.mxu3 }
 0x18e   :  { %v929_v12 = vadd.f32 %v928_v8, %v900_v3 }
 0x190   :  { %v958_v31 = vadd.f32 %v957_v27, %v929_v12 }
 0x192   :  { %v975_v35 = vmul.f32 %v967_v30, %v958_v31 }
 0x194   :  { %1143 = vmatmul.msk.f32.gmra.mxu2 %vm996_vm1, %v975_v35 }
 0x1bb   :  { %v1026_v54 = vpop.f32.mrf.mxu1 }
 0x1c3   :  { %v1029_v58 = vpop.f32.mrf.mxu1 }
 0x1cb   :  { %v1032_v0 = vpop.f32.mrf.mxu1 }
 0x1d3   :  { %v1035_v5 = vpop.f32.mrf.mxu1 }
 0x1ff   :  { %v1055_v56 = vpop.f32.mrf.mxu2 }
 0x200   :  { %v1056_v14 = vadd.f32 %v1055_v56, %v1026_v54 }
 0x207   :  { %v1058_v61 = vpop.f32.mrf.mxu2 }
 0x208   :  { %v1059_v13 = vadd.f32 %v1058_v61, %v1029_v58 }
 0x20f   :  { %v1061_v4 = vpop.f32.mrf.mxu2 }
 0x210   :  { %v1062_v11 = vadd.f32 %v1061_v4, %v1032_v0 }
 0x217   :  { %v1064_v6 = vpop.f32.mrf.mxu2 }
 0x218   :  { %v1065_v9 = vadd.f32 %v1064_v6, %v1035_v5 }
 0x21a   :  { %1087 = vmatpush.msra.mxu3 %v1065_v9 }
 0x21c   :  { %1088 = vmatpush.msra.mxu3 %v1062_v11 }
 0x21e   :  { %1089 = vmatpush.msra.mxu3 %v1059_v13 }
 0x220   :  { %1090 = vmatpush.msra.mxu3 %v1056_v14 }
 0x221   :  { %1144 = vmatmul.msk.f32.vlgmr.msra.gmra.mxu3 %vm996_vm1, %v1067_v15 }
 0x2a4   :  { %v1092_v17 = vpop.f32.mrf.mxu3 }
 0x2a5   :  { %v1093_v18 = vadd.f32 %v1157_v16, %v1092_v17 }
 0x2a7   :  { %1095 = vst [vmem:[#allocation2] sm:$0x3] %v1093_v18 }
 0x2a8   :  { %1106 = dma.vmem_to_hbm [thread:$0]  %s1102_s23, 32, %s1104_s26, [#allocation3]  }
 0x2a9   :  { %1182 = dma.done.wait [#allocation3], 32  }
 0x2aa   :  { %1183 = vsyncadd [#allocation3], 4294967264 }
 0x2ab   :  { %1111 = vsyncpa [#allocation3], 1 }

</bundles_post_ra>
